<compile_context>
chip_gen: v6e
topology: v6e:2x2x1
jax: 0.10.0
libtpu: 0.0.40
codegen_flags: <defaults>
</compile_context>

<pallas_src>
import jax
import jax.numpy as jnp
from jax import lax
from jax.experimental import pallas as pl
from jax.experimental.pallas import tpu as pltpu


_NT_DIMS = (((1,), (1,)), ((), ()))   # contract dim 1 of both operands: A @ B^T


def _attention_layer_kernel(x_ref, w_ref, b_ref, o_ref):
    # x_ref: (TB, D) streamed tile        w_ref: (D, D) PyTorch-layout weight (resident)
    # b_ref: (1, D) f32 bias (resident)   o_ref: (1, TB) lane-dense output
    x = x_ref[...]

    # Linear: logits[t, o] = sum_i x[t, i] * w[o, i]   (MXU, f32 accumulation)
    logits = lax.dot_general(x, w_ref[...], _NT_DIMS,
                             preferred_element_type=jnp.float32) + b_ref[...]

    # Numerically-stable softmax over the feature (lane) axis; all math in f32.
    m = jnp.max(logits, axis=1, keepdims=True)
    e = jnp.exp(logits - m)                          # (TB, D) f32 un-normalized weights

    # Per-row reductions produced directly in lane-dense (1, TB) layout:
    #   denom[0, t] = sum_d e[t, d]        num[0, t] = sum_d e[t, d] * x[t, d]
    ones = jnp.ones((1, e.shape[1]), jnp.float32)
    denom = lax.dot_general(ones, e, _NT_DIMS, preferred_element_type=jnp.float32)
    num = lax.dot_general(ones, e * x.astype(jnp.float32), _NT_DIMS,
                          preferred_element_type=jnp.float32)

    # out = num / denom; approx reciprocal runs on the EUP slot (~free), folded so no
    # (TB, D) `weights` temporary is ever materialized.
    o_ref[...] = (num * pl.reciprocal(denom, approx=True)).astype(o_ref.dtype)


def _round_up(v, m):
    return ((v + m - 1) // m) * m


def _vmem_limit_bytes():
    """Generation-aware VMEM budget: ~3/4 of physical VMEM (96 MiB on 128-MiB
    v5e/v6e, 48 MiB on 64-MiB-per-core v7x)."""
    cap = 64 * 1024 * 1024                       # conservative default (v7x per-core)
    try:
        cap = int(pltpu.get_tpu_info().vmem_capacity_bytes)
    except Exception:
        pass
    return (cap * 3) // 4


def _choose_batch_tile(batch, d, x_itemsize, vmem_limit, target_tile_bytes=8 << 20):
    """Byte-targeted batch tile: ~target_tile_bytes of streamed x per grid step,
    bounded by what fits next to the (single-buffered) resident W in VMEM."""
    sub = 16 if x_itemsize < 4 else 8            # sublane packing for narrow dtypes
    batch_aligned = _round_up(batch, sub)
    resident = d * d * x_itemsize + d * 4        # W (x.dtype) + f32 bias, single-buffered
    headroom = 2 << 20
    # per-row VMEM: double-buffered x row + ~4 f32 (TB, D) temporaries (logits/e/xf/e*x)
    per_row = d * (2 * x_itemsize + 4 * 4)
    avail = vmem_limit - resident - headroom
    tb = min(avail // per_row, max(sub, target_tile_bytes // (d * x_itemsize)))
    if tb >= batch_aligned:
        return int(batch_aligned)                # a single tile covers the whole batch
    if tb < 128:
        # TODO(synk): add a K-tiled (contraction-split over D) fallback so very large D
        # keeps big batch tiles instead of failing here.
        raise NotImplementedError(
            f"D={d} too large for the resident-weight kernel at VMEM limit "
            f"{vmem_limit} bytes; K-tiled fallback not implemented.")
    return int((tb // 128) * 128)                # lane-dense (1, tb) out needs tb % 128 == 0


def attention_layer(x, w, b, *, tb=None, x_buffer_count=None):
    """x: (B, D); w: PyTorch-layout Linear weight (D_out, D_in) (must be square);
    b: (D_out,).  Returns (B,) in x.dtype, matching torch.sum(..., dim=1)."""
    B, D = x.shape
    assert w.shape == (D, D), "AttentionLayer.forward requires output_dim == input_dim"
    assert b.shape == (D,)

    # Keep W in PyTorch (out, in) layout: the kernel contracts dim 1 of both operands,
    # so there is no wrapper-side transpose copy.  Cast W to x.dtype so bf16 activations
    # drive the MXU at its bf16 rate with half the weight residency.
    w_c = w.astype(x.dtype)
    b2 = b.astype(jnp.float32).reshape(1, D)     # f32 bias added post-matmul

    itemsize = jnp.dtype(x.dtype).itemsize
    vmem_limit = _vmem_limit_bytes()
    if tb is None:
        tb = _choose_batch_tile(B, D, itemsize, vmem_limit)
    else:
        sub = 16 if itemsize < 4 else 8
        tb = max(sub, _round_up(int(tb), sub))
        if tb < B and tb % 128 != 0:
            tb = _round_up(tb, 128)              # multi-tile lane-dense out: tb % 128 == 0

    num_tiles = pl.cdiv(B, tb)

    def build(conservative):
        def spec(block_shape, index_map, mode):
            if conservative or mode is None:
                return pl.BlockSpec(block_shape, index_map)
            return pl.BlockSpec(block_shape, index_map, pipeline_mode=mode)

        resident_mode = pl.Buffered(buffer_count=1)          # W / bias never change
        x_mode = (pl.Buffered(buffer_count=int(x_buffer_count))
                  if x_buffer_count is not None else None)
        limit = min(vmem_limit, 48 * 1024 * 1024) if conservative else vmem_limit
        return pl.pallas_call(
            _attention_layer_kernel,
            out_shape=jax.ShapeDtypeStruct((1, num_tiles * tb), x.dtype),
            grid=(num_tiles,),
            in_specs=[
                spec((tb, D), lambda i: (i, 0), x_mode),      # streamed x tiles
                spec((D, D), lambda i: (0, 0), resident_mode),  # resident W
                spec((1, D), lambda i: (0, 0), resident_mode),  # resident bias
            ],
            out_specs=pl.BlockSpec((1, tb), lambda i: (0, i)),  # lane-dense output
            compiler_params=pltpu.CompilerParams(
                dimension_semantics=("parallel",),              # megacore split on v7x
                vmem_limit_bytes=int(limit),
            ),
        )

    try:
        out = build(conservative=False)(x, w_c, b2)
    except Exception:
        # Fallback: default double-buffering and a conservative VMEM limit, in case the
        # installed jax rejects pipeline_mode=Buffered(1) or the raised vmem limit.
        out = build(conservative=True)(x, w_c, b2)

    # Columns past B correspond to the masked tail rows of the last tile (garbage but
    # row-independent); slice them away.
    return out[0, :B]


def _reference(x, w, b):
    logits = x.astype(jnp.float32) @ w.astype(jnp.float32).T + b.astype(jnp.float32)
    logits = logits - jnp.max(logits, axis=1, keepdims=True)
    e = jnp.exp(logits)
    weights = e / jnp.sum(e, axis=1, keepdims=True)
    return jnp.sum(weights * x.astype(jnp.float32), axis=1)


if __name__ == "__main__":
    key = jax.random.PRNGKey(0)

    configs = [
        # Multi-tile grid with a partial last tile (no wrapper-side padding of x).
        dict(B=300, D=128, dtype=jnp.float32, tb=128, tol=1e-2),
        # Tiny shape exercising the auto (single-tile) byte-targeted heuristic.
        dict(B=8, D=32, dtype=jnp.float32, tb=None, tol=1e-2),
        # bf16 activations/weights into the MXU; softmax math stays f32 in-kernel.
        dict(B=64, D=128, dtype=jnp.bfloat16, tb=None, tol=2.5e-2),
    ]
    for cfg in configs:
        B, D = cfg["B"], cfg["D"]
        kx, kw, kb, key = jax.random.split(key, 4)
        x = jax.random.normal(kx, (B, D), dtype=jnp.float32).astype(cfg["dtype"])
        # Deterministic "Linear" params (PyTorch layout: weight (out, in), bias (out,))
        w = jax.random.normal(kw, (D, D), dtype=jnp.float32) * (1.0 / jnp.sqrt(D))
        b = jax.random.normal(kb, (D,), dtype=jnp.float32) * 0.01

        out = attention_layer(x, w, b, tb=cfg["tb"])
        out = jax.block_until_ready(out)

        ref = _reference(x, w, b)
        assert out.shape == (B,), out.shape
        # Tolerance covers the EUP approximate reciprocal (~1e-3 rel), MXU-accumulated
        # row reductions, and (last config) bf16 weights/activations on the MXU.
        assert jnp.allclose(out.astype(jnp.float32), ref,
                            atol=cfg["tol"], rtol=cfg["tol"]), f"mismatch vs ref: {cfg}"

    print("KERNEL_OK")
</pallas_src>

<mosaic_0001>
module attributes {stable_mosaic.version = 11 : i64} {
  func.func @_attention_layer_kernel(%arg0: i32, %arg1: memref<128x128xf32, #tpu.memory_space<vmem>>, %arg2: memref<128x128xf32, #tpu.memory_space<vmem>>, %arg3: memref<1x128xf32, #tpu.memory_space<vmem>>, %arg4: memref<1x128xf32, #tpu.memory_space<vmem>>) attributes {dimension_semantics = [#tpu.dimension_semantics<parallel>], iteration_bounds = array<i64: 3>, scalar_prefetch = 0 : i64, scratch_operands = 0 : i64, tpu.core_type = #tpu.core_type<tc>, window_params = [{transform_indices = @transform_0, window_bounds = array<i64: 128, 128>}, {pipeline_mode = #tpu.pipeline_mode<synchronous>, transform_indices = @transform_1, window_bounds = array<i64: 128, 128>}, {pipeline_mode = #tpu.pipeline_mode<synchronous>, transform_indices = @transform_2, window_bounds = array<i64: 1, 128>}, {transform_indices = @transform_3, window_bounds = array<i64: 1, 128>}]} {
    %c0 = arith.constant 0 : index
    %c0_0 = arith.constant 0 : index
    %0 = vector.load %arg1[%c0, %c0_0] : memref<128x128xf32, #tpu.memory_space<vmem>>, vector<128x128xf32>
    %c0_1 = arith.constant 0 : index
    %c0_2 = arith.constant 0 : index
    %1 = vector.load %arg2[%c0_1, %c0_2] : memref<128x128xf32, #tpu.memory_space<vmem>>, vector<128x128xf32>
    %cst = arith.constant dense<0.000000e+00> : vector<128x128xf32>
    %2 = tpu.matmul %0, %1, %cst {dimension_numbers = #tpu.dot_dimension_numbers<[1], [1], [0], [0], [0, 0, 1, 0], [], []>} : vector<128x128xf32>, vector<128x128xf32>, vector<128x128xf32> -> vector<128x128xf32>
    %c0_3 = arith.constant 0 : index
    %c0_4 = arith.constant 0 : index
    %3 = vector.load %arg3[%c0_3, %c0_4] : memref<1x128xf32, #tpu.memory_space<vmem>>, vector<1x128xf32>
    %4 = vector.broadcast %3 : vector<1x128xf32> to vector<128x128xf32>
    %5 = arith.addf %2, %4 : vector<128x128xf32>
    %cst_5 = arith.constant dense<0xFF800000> : vector<128xf32>
    %6 = vector.multi_reduction <maximumf>, %5, %cst_5 [1] : vector<128x128xf32> to vector<128xf32>
    %7 = vector.shape_cast %6 : vector<128xf32> to vector<128x1xf32>
    %8 = vector.broadcast %7 : vector<128x1xf32> to vector<128x128xf32>
    %9 = arith.subf %5, %8 : vector<128x128xf32>
    %10 = math.exp %9 : vector<128x128xf32>
    %cst_6 = arith.constant 1.000000e+00 : f32
    %11 = vector.broadcast %cst_6 : f32 to vector<1x128xf32>
    %cst_7 = arith.constant dense<0.000000e+00> : vector<1x128xf32>
    %12 = tpu.matmul %11, %10, %cst_7 {dimension_numbers = #tpu.dot_dimension_numbers<[1], [1], [0], [0], [0, 0, 1, 0], [], []>} : vector<1x128xf32>, vector<128x128xf32>, vector<1x128xf32> -> vector<1x128xf32>
    %13 = arith.mulf %10, %0 : vector<128x128xf32>
    %cst_8 = arith.constant dense<0.000000e+00> : vector<1x128xf32>
    %14 = tpu.matmul %11, %13, %cst_8 {dimension_numbers = #tpu.dot_dimension_numbers<[1], [1], [0], [0], [0, 0, 1, 0], [], []>} : vector<1x128xf32>, vector<128x128xf32>, vector<1x128xf32> -> vector<1x128xf32>
    %15 = tpu.reciprocal %12 {approx = true} : vector<1x128xf32> -> vector<1x128xf32>
    %16 = arith.mulf %14, %15 : vector<1x128xf32>
    %c0_9 = arith.constant 0 : index
    %c0_10 = arith.constant 0 : index
    %17 = vector.load %arg4[%c0_9, %c0_10] : memref<1x128xf32, #tpu.memory_space<vmem>>, vector<1x128xf32>
    tpu.vector_store %arg4[%c0_9, %c0_10], %16 {strides = array<i32>} : memref<1x128xf32, #tpu.memory_space<vmem>>, vector<1x128xf32>,
    return
  }
  func.func @transform_0(%arg0: i32) -> (i32, i32) {
    %c0_i32 = arith.constant 0 : i32
    %c0_i32_0 = arith.constant 0 : i32
    return %arg0, %c0_i32 : i32, i32
  }
  func.func @transform_1(%arg0: i32) -> (i32, i32) {
    %c0_i32 = arith.constant 0 : i32
    %c0_i32_0 = arith.constant 0 : i32
    %c0_i32_1 = arith.constant 0 : i32
    return %c0_i32, %c0_i32_0 : i32, i32
  }
  func.func @transform_2(%arg0: i32) -> (i32, i32) {
    %c0_i32 = arith.constant 0 : i32
    %c0_i32_0 = arith.constant 0 : i32
    %c0_i32_1 = arith.constant 0 : i32
    return %c0_i32, %c0_i32_0 : i32, i32
  }
  func.func @transform_3(%arg0: i32) -> (i32, i32) {
    %c0_i32 = arith.constant 0 : i32
    %c0_i32_0 = arith.constant 0 : i32
    return %c0_i32, %arg0 : i32, i32
  }
}

module attributes {stable_mosaic.version = 11 : i64} {
  func.func @_attention_layer_kernel(%arg0: i32, %arg1: memref<128x128xf32, #tpu.memory_space<vmem>>, %arg2: memref<128x128xf32, #tpu.memory_space<vmem>>, %arg3: memref<1x128xf32, #tpu.memory_space<vmem>>, %arg4: memref<1x128xf32, #tpu.memory_space<vmem>>) attributes {dimension_semantics = [#tpu.dimension_semantics<parallel>], iteration_bounds = array<i64: 3>, scalar_prefetch = 0 : i64, scratch_operands = 0 : i64, tpu.core_type = #tpu.core_type<tc>, window_params = [{transform_indices = @transform_0, window_bounds = array<i64: 128, 128>}, {pipeline_mode = #tpu.pipeline_mode<synchronous>, transform_indices = @transform_1, window_bounds = array<i64: 128, 128>}, {pipeline_mode = #tpu.pipeline_mode<synchronous>, transform_indices = @transform_2, window_bounds = array<i64: 1, 128>}, {transform_indices = @transform_3, window_bounds = array<i64: 1, 128>}]} {
    %c0 = arith.constant 0 : index
    %c0_0 = arith.constant 0 : index
    %0 = vector.load %arg1[%c0, %c0_0] : memref<128x128xf32, #tpu.memory_space<vmem>>, vector<128x128xf32>
    %c0_1 = arith.constant 0 : index
    %c0_2 = arith.constant 0 : index
    %1 = vector.load %arg2[%c0_1, %c0_2] : memref<128x128xf32, #tpu.memory_space<vmem>>, vector<128x128xf32>
    %cst = arith.constant dense<0.000000e+00> : vector<128x128xf32>
    %2 = tpu.matmul %0, %1, %cst {dimension_numbers = #tpu.dot_dimension_numbers<[1], [1], [0], [0], [0, 0, 1, 0], [], []>} : vector<128x128xf32>, vector<128x128xf32>, vector<128x128xf32> -> vector<128x128xf32>
    %c0_3 = arith.constant 0 : index
    %c0_4 = arith.constant 0 : index
    %3 = vector.load %arg3[%c0_3, %c0_4] : memref<1x128xf32, #tpu.memory_space<vmem>>, vector<1x128xf32>
    %4 = vector.broadcast %3 : vector<1x128xf32> to vector<128x128xf32>
    %5 = arith.addf %2, %4 : vector<128x128xf32>
    %cst_5 = arith.constant dense<0xFF800000> : vector<128xf32>
    %6 = vector.multi_reduction <maximumf>, %5, %cst_5 [1] : vector<128x128xf32> to vector<128xf32>
    %7 = vector.shape_cast %6 : vector<128xf32> to vector<128x1xf32>
    %8 = vector.broadcast %7 : vector<128x1xf32> to vector<128x128xf32>
    %9 = arith.subf %5, %8 : vector<128x128xf32>
    %10 = math.exp %9 : vector<128x128xf32>
    %cst_6 = arith.constant 1.000000e+00 : f32
    %11 = vector.broadcast %cst_6 : f32 to vector<1x128xf32>
    %cst_7 = arith.constant dense<0.000000e+00> : vector<1x128xf32>
    %12 = tpu.matmul %11, %10, %cst_7 {dimension_numbers = #tpu.dot_dimension_numbers<[1], [1], [0], [0], [0, 0, 1, 0], [], []>} : vector<1x128xf32>, vector<128x128xf32>, vector<1x128xf32> -> vector<1x128xf32>
    %13 = arith.mulf %10, %0 : vector<128x128xf32>
    %cst_8 = arith.constant dense<0.000000e+00> : vector<1x128xf32>
    %14 = tpu.matmul %11, %13, %cst_8 {dimension_numbers = #tpu.dot_dimension_numbers<[1], [1], [0], [0], [0, 0, 1, 0], [], []>} : vector<1x128xf32>, vector<128x128xf32>, vector<1x128xf32> -> vector<1x128xf32>
    %15 = tpu.reciprocal %12 {approx = true} : vector<1x128xf32> -> vector<1x128xf32>
    %16 = arith.mulf %14, %15 : vector<1x128xf32>
    %c0_9 = arith.constant 0 : index
    %c0_10 = arith.constant 0 : index
    %17 = vector.load %arg4[%c0_9, %c0_10] : memref<1x128xf32, #tpu.memory_space<vmem>>, vector<1x128xf32>
    tpu.vector_store %arg4[%c0_9, %c0_10], %16 {strides = array<i32>} : memref<1x128xf32, #tpu.memory_space<vmem>>, vector<1x128xf32>,
    return
  }
  func.func @transform_0(%arg0: i32) -> (i32, i32) {
    %c0_i32 = arith.constant 0 : i32
    %c0_i32_0 = arith.constant 0 : i32
    return %arg0, %c0_i32 : i32, i32
  }
  func.func @transform_1(%arg0: i32) -> (i32, i32) {
    %c0_i32 = arith.constant 0 : i32
    %c0_i32_0 = arith.constant 0 : i32
    %c0_i32_1 = arith.constant 0 : i32
    return %c0_i32, %c0_i32_0 : i32, i32
  }
  func.func @transform_2(%arg0: i32) -> (i32, i32) {
    %c0_i32 = arith.constant 0 : i32
    %c0_i32_0 = arith.constant 0 : i32
    %c0_i32_1 = arith.constant 0 : i32
    return %c0_i32, %c0_i32_0 : i32, i32
  }
  func.func @transform_3(%arg0: i32) -> (i32, i32) {
    %c0_i32 = arith.constant 0 : i32
    %c0_i32_0 = arith.constant 0 : i32
    return %c0_i32, %arg0 : i32, i32
  }
}

</mosaic_0001>

<bundles_post_ra>
// kernel: tpu_custom_call.1
= control target key start
LH: loop header
LB: loop body
LE: loop exit
PB: predicated region body
PF: predicated region fallthrough
CT: control target
= control target key end

     0   :  { %8 = vsyncpa [#allocation3], 0  ;;  %s1501_s0 = inlined_call_operand.hbm [shape: f32[300,128], index: 0, kind: input, shape index: {}]   ;;  %s1502_s1 = inlined_call_operand.hbm [shape: f32[128,128], index: 1, kind: input, shape index: {}]   ;;  %s1503_s2 = inlined_call_operand.vmem [shape: f32[1,128], index: 2, kind: input, shape index: {}]   ;;  %s1504_s3 = inlined_call_operand.hbm [shape: f32[1,384], index: 3, kind: output, shape index: {}]  }
   0x1   :  { %10 = vsyncpa [#allocation3 + $0x1], 0 }
   0x2   :  { %11 = vsyncpa [#allocation6], 0 }
   0x3   :  { %12 = vsyncpa [#allocation4], 0 }
   0x4   :  { %14 = vsyncpa [#allocation4 + $0x1], 0  ;;  %s1181_s12 = smov 0   ;;  %s1183_s13 = smov 0  }
   0x5   :  { %s1185_s14 = smov 0   ;;  %s1187_s15 = smov 0  }
   0x6 LB: > { %s1202_s16 = sadd.s32 4294967295, %s1149_s15   ;;  %s726_s17 = sadd.s32 4294967294, %s1149_s15   ;;  %s1149_s15 = sphi %s1187_s15, %s1518_s15   ;;  %s1145_s14 = sphi %s1185_s14, %s1517_s14   ;;  %s1141_s13 = sphi %s1183_s13, %s1516_s13   ;;  %s1137_s12 = sphi %s1181_s12, %s1515_s12  }
   0x7   : > { %s1206_s18 = sadd.s32 1, %s1149_s15   ;;  %s27_s19 = sadd.s32 1, %s1145_s14 }
   0x8   : > { %s24_s20 = ssub.s32 %s1149_s15, %s1206_s18  ;;  %p34_p0 = scmp.ne.s32.totalorder %s1145_s14, %s1141_s13 }
   0x9   : > { %p25_p1 = scmp.eq.s32.totalorder %s24_s20, 0  ;;  %p35_p2 = scmp.eq.s32.totalorder %s1149_s15, 0 }
   0xa   : > { %p40_p3 = scmp.ne.s32.totalorder %s1141_s13, %s1137_s12  ;;  %p41_p4 = scmp.eq.s32.totalorder %s1202_s16, 0 }
   0xb   : > { %s1218_s21 = scalar_select %p25_p1, %s1145_s14, %s27_s19  }
   0xc   : > { %p1220_p5 = por %p35_p2, %p34_p0  ;;  %p1226_p6 = por %p41_p4, %p40_p3 }
   0xd   : > { %p106_p7 = scmp.eq.s32.totalorder %s1202_s16, 2  ;;  %p112_p8 = scmp.eq.s32.totalorder %s726_s17, 2 }
   0xe   : > { %s1508_s23 = scalar_select %p1226_p6, 1, 0 }
   0xf   : > { %p727_p9 = scmp.ge.s32.totalorder %s1149_s15, 1  ;;  %p119_p10 = scmp.lt.s32.totalorder %s1149_s15, 4 }
  0x10   : > { %p1233_p11 = por %p106_p7, %p34_p0  ;;  %p1237_p12 = por %p112_p8, %p40_p3 }
  0x11   : > { %p1241_p13 = pnand %p727_p9, %p119_p10  ;;  %s1151_s27 = smov [#allocation5]  }
  0x12   : > { %s1509_s24 = scalar_select %p1233_p11, 1, 0 }
  0x13   : > { %s1510_s25 = scalar_select %p1237_p12, 1, 0 }
  0x14   : > { %p944_p1 = pneg %p1241_p13  ;;  %s131_s28 = sshll.u32 %s1151_s27, 4  ;;  %s132_s28 = int_to_ptr.vmem [resolvable:$true] %s131_s28 }
  0x15   : > { %s1040_s29 = scalar_lea.vmem %s132_s28, 2048  ;;  %p1048_p8 = scmp.lt.s32.totalorder %s132_s28, %s132_s28 }
  0x16   : > { %p945_p2 = pnand %p944_p1, %p41_p4  ;;  %p1041_p7 = scmp.ne.s32.totalorder %s132_s28, %s1040_s29 }
  0x17   : > { %p1049_p6 = scmp.lt.s32.totalorder %s1040_s29, %s1040_s29 }
  0x18   : > { %p1031_p0 = pneg %p945_p2 }
  0x19   : > { %p1050_p12 = por %p1049_p6, %p1048_p8 }
  0x1a   : > { %p1043_p11 = pnand %p1041_p7, %p1031_p0 }
  0x1c   : > { %p1044_p3 = pneg %p1043_p11 }
  0x1e   : > { %p1051_p9 = pnand %p1050_p12, %p1044_p3 }
  0x20   : > { %1054 = shalt.err (!%p1051_p9)
}
  0x21   : > { %s1152_s30 = smov 128   ;;  %s1153_s4 = smov 8  }
  0x22   : > { %947 = dma.hbm_to_vmem [thread:$0]  (!%p945_p2), %s1502_s1, 2048, %s132_s28, [#allocation6], %s1152_s30, %s1152_s30, %s1153_s4  }
  0x23   : > { %p729_p10 = scmp.ge.s32.totalorder %s1149_s15, 3 }
  0x25   : > { %144 = sbr.rel (%p729_p10) target bundleno = 74 (0x4a), region = 24 }
  0x2a   : > { %147 = sbr.rel (!%p1220_p5) target bundleno = 74 (0x4a), region = 28  ;;  %s148_s7 = sand.u32 (%p1220_p5), 1, %s1145_s14  }
  0x2b   : > { %s731_s8 = sshll.u32 (%p1220_p5), %s1149_s15, 4  ;;  %s730_s9 = sshll.u32 (%p1220_p5), %s148_s7, 7 }
  0x2c   : > { %s154_s10 = ssub.s32 (%p1220_p5), 38, %s731_s8  ;;  %s1260_s19 = scalar_lea.sflag (%p1220_p5), [#allocation3], %s148_s7 }
  0x2d   : > { %p155_p6 = scmp.lt.s32.totalorder (%p1220_p5), %s154_s10, 16  ;;  %s152_s20 = scalar_lea.vmem (%p1220_p5), [#allocation2], %s730_s9 }
  0x2f   : > { %s1520_s10 = smov (!%p155_p6, %s154_s10), 16 }
  0x30   : > { %s1257_s11 = sshll.u32 %s1520_s10, 7 }
  0x31   : > { %s159_s17 = ssub.s32 2048, %s1257_s11 }
  0x32   : > { %160 = vsyncadd %s1260_s19, %s159_s17  ;;  %p733_p5 = scmp.ne.s32.totalorder %s1257_s11, 0  ;;  %s744_s22 = sshll.u32 %s1149_s15, 11 }
  0x33   : > { %s1268_s29 = scalar_lea.hbm %s1501_s0, %s744_s22  ;;  %s165_s30 = sshll.u32 %s152_s20, 4  ;;  %s1270_s30 = int_to_ptr.vmem [resolvable:$true] %s165_s30 }
  0x34   : > { %s1055_s4 = scalar_lea.hbm %s1268_s29, %s1257_s11  ;;  %s1059_s7 = scalar_lea.hbm %s1501_s0, 4864 }
  0x35   : > { %p1056_p11 = scmp.ne.s32.totalorder %s1268_s29, %s1055_s4  ;;  %p1060_p2 = scmp.lt.s32.totalorder %s1268_s29, %s1501_s0 }
  0x36   : > { %p1061_p0 = scmp.lt.s32.totalorder %s1059_s7, %s1055_s4 }
  0x37   : > { %p1057_p12 = pnand %p1056_p11, %p733_p5 }
  0x38   : > { %p1062_p7 = por %p1061_p0, %p1060_p2 }
  0x39   : > { %p1058_p1 = pneg %p1057_p12 }
  0x3b   : > { %p1063_p3 = pnand %p1062_p7, %p1058_p1 }
  0x3d   : > { %1066 = shalt.err (!%p1063_p3)
}
  0x3e   : > { %s1067_s10 = scalar_lea.vmem %s1270_s30, %s1257_s11  ;;  %s1154_s17 = smov [#allocation2]  }
  0x3f   : > { %p1068_p8 = scmp.ne.s32.totalorder %s1270_s30, %s1067_s10  ;;  %s1071_s20 = sshll.u32 %s1154_s17, 4  ;;  %s1072_s20 = int_to_ptr.vmem [resolvable:$false] %s1071_s20 }
  0x40   : > { %s1073_s22 = scalar_lea.vmem %s1072_s20, 4096  ;;  %p1074_p6 = scmp.lt.s32.totalorder %s1270_s30, %s1072_s20 }
  0x41   : > { %p1069_p9 = pnand %p1068_p8, %p733_p5  ;;  %p1075_p11 = scmp.lt.s32.totalorder %s1073_s22, %s1067_s10 }
  0x43   : > { %p1070_p10 = pneg %p1069_p9  ;;  %p1076_p12 = por %p1075_p11, %p1074_p6 }
  0x45   : > { %p1077_p2 = pnand %p1076_p12, %p1070_p10 }
  0x47   : > { %1080 = shalt.err (!%p1077_p2)
}
  0x48   : > { %s1155_s27 = smov 128   ;;  %s1156_s28 = smov 8  }
  0x49   : > { %171 = dma.hbm_to_vmem [thread:$0]  (%p733_p5), %s1268_s29, %s1257_s11, %s1270_s30, %s1260_s19, %s1155_s27, %s1155_s27, %s1156_s28  }
  0x4a PF: > { %177 = sbr.rel (%p1241_p13) target bundleno = 811 (0x32b), region = 32  ;;  %s1299_s4 = sand.u32 (!%p1241_p13), 1, %s1141_s13  }
  0x4b   : > { %s738_s5 = sshll.u32 (!%p1241_p13), %s1299_s4, 7  ;;  %s180_s6 = scalar_lea.sflag (!%p1241_p13), [#allocation3], %s1299_s4 }
  0x4c   : > { %s1303_s7 = scalar_lea.vmem (!%p1241_p13), [#allocation2], %s738_s5  ;;  %p1512_p1 = scmp.ne.s32.totalorder (!%p1241_p13), %s1508_s23, 0 }
  0x4f   : > { %1124 = dma.done.wait (%p1512_p1), %s180_s6, 2048  }
  0x50   : > { %1126 = vsyncadd (%p1512_p1), %s180_s6, 4294965248 }
  0x51   : > { %1128 = dma.done.wait (%p41_p4), [#allocation6], 2048  }
  0x52   : > { %1130 = vsyncadd (%p41_p4), [#allocation6], 4294965248  ;;  %v245_v0 = vld [vmem:[#allocation5 + $0x78] sm:$0xff]  ;;  %v244_v1 = vld [vmem:[#allocation5 + $0x70] sm:$0xff]  ;;  %vm1158_vm0 = vmmov 0   ;;  %s741_s11 = sshll.u32 %s1202_s16, 4 }
  0x53   : > { %811 = vmatprep.subr.mxu0 %v245_v0  ;;  %v243_v2 = vld [vmem:[#allocation5 + $0x68] sm:$0xff]  ;;  %v1314_v3 = vld [vmem:[%s1303_s7] sm:$0xff]  ;;  %v241_v5 = vld [vmem:[#allocation5 + $0x58] sm:$0xff]  ;;  %s208_s19 = scalar_lea.vmem [#allocation7], %s1299_s4  ;;  %s648_s9 = scalar_lea.hbm %s1504_s3, %s741_s11 }
  0x54   : > { %812 = vmatpush3.xpose.msra.mxu0 %v245_v0  ;;  %843 = vmatprep.mubr.f32.mxu0 %v1314_v3  ;;  %v242_v4 = vld [vmem:[#allocation5 + $0x60] sm:$0xff]  ;;  %v240_v6 = vld [vmem:[#allocation5 + $0x50] sm:$0xff]  ;;  %v239_v7 = vld [vmem:[#allocation5 + $0x48] sm:$0xff]  ;;  %s650_s29 = sshll.u32 %s208_s19, 4  ;;  %s638_s10 = scalar_lea.sflag [#allocation4], %s1299_s4  ;;  %s651_s29 = int_to_ptr.vmem [resolvable:$true] %s650_s29 }
  0x55   : > { %813 = vmatprep.subr.mxu0 %v244_v1  ;;  %v238_v8 = vld [vmem:[#allocation5 + $0x40] sm:$0xff]  ;;  %v237_v9 = vld [vmem:[#allocation5 + $0x38] sm:$0xff]  ;;  %v236_v10 = vld [vmem:[#allocation5 + $0x30] sm:$0xff]  ;;  %s1081_s17 = scalar_lea.vmem %s651_s29, 16  ;;  %p1513_p13 = scmp.ne.s32.totalorder %s1509_s24, 0 }
  0x56   : > { %v235_v11 = vld [vmem:[#allocation5 + $0x28] sm:$0xff]  ;;  %v234_v12 = vld [vmem:[#allocation5 + $0x20] sm:$0xff]  ;;  %v233_v13 = vld [vmem:[#allocation5 + $0x18] sm:$0xff]  ;;  %p1082_p4 = scmp.ne.s32.totalorder %s651_s29, %s1081_s17  ;;  %s1160_s20 = smov [#allocation7]  }
  0x57   : > { %v232_v14 = vld [vmem:[#allocation5 + $0x10] sm:$0xff]  ;;  %v231_v15 = vld [vmem:[#allocation5 + $0x8] sm:$0xff]  ;;  %v230_v16 = vld [vmem:[#allocation5] sm:$0xff]  ;;  %s1085_s22 = sshll.u32 %s1160_s20, 4  ;;  %s1086_s22 = int_to_ptr.vmem [resolvable:$false] %s1085_s22 }
  0x58   : > { %814 = vmatpush3.xpose.msra.mxu0 %v244_v1  ;;  %v1318_v17 = vld [vmem:[%s1303_s7 + $0x8] sm:$0xff]  ;;  %v1321_v18 = vld [vmem:[%s1303_s7 + $0x10] sm:$0xff]  ;;  %v1326_v19 = vld [vmem:[%s1303_s7 + $0x18] sm:$0xff]  ;;  %v1157_v1 = vmov 0.0   ;;  %p1083_p5 = pnand %p1082_p4, %p1513_p13  ;;  %s1087_s16 = scalar_lea.vmem %s1086_s22, 32 }
  0x59   : > { %815 = vmatprep.subr.mxu0 %v243_v2  ;;  %v1329_v20 = vld [vmem:[%s1303_s7 + $0x20] sm:$0xff]  ;;  %v1334_v21 = vld [vmem:[%s1303_s7 + $0x28] sm:$0xff]  ;;  %v1337_v22 = vld [vmem:[%s1303_s7 + $0x30] sm:$0xff]  ;;  %867 = vmatprep.subr.mxu1 %v1157_v1  ;;  %p1088_p7 = scmp.lt.s32.totalorder %s651_s29, %s1086_s22  ;;  %p1089_p3 = scmp.lt.s32.totalorder %s1087_s16, %s1081_s17 }
  0x5a   : > { %v1342_v23 = vld [vmem:[%s1303_s7 + $0x38] sm:$0xff]  ;;  %v1345_v24 = vld [vmem:[%s1303_s7 + $0x40] sm:$0xff]  ;;  %v1350_v25 = vld [vmem:[%s1303_s7 + $0x48] sm:$0xff]  ;;  %899 = vmatprep.mubr.msk.f32.mxu1 %vm1158_vm0, %v1157_v1  ;;  %p1084_p0 = pneg %p1083_p5 }
  0x5b   : > { %v1353_v26 = vld [vmem:[%s1303_s7 + $0x50] sm:$0xff]  ;;  %v1358_v27 = vld [vmem:[%s1303_s7 + $0x58] sm:$0xff]  ;;  %v1361_v28 = vld [vmem:[%s1303_s7 + $0x60] sm:$0xff]  ;;  %p1090_p8 = por %p1089_p3, %p1088_p7 }
  0x5c   : > { %816 = vmatpush3.xpose.msra.mxu0 %v243_v2  ;;  %v1366_v29 = vld [vmem:[%s1303_s7 + $0x68] sm:$0xff]  ;;  %v1369_v30 = vld [vmem:[%s1303_s7 + $0x70] sm:$0xff]  ;;  %v1374_v31 = vld [vmem:[%s1303_s7 + $0x78] sm:$0xff] }
  0x5d   : > { %817 = vmatprep.subr.mxu0 %v242_v4  ;;  %v740_v44 = vld [vmem:[%s1503_s2] ss:$0 sm:$0xff]  ;;  %p1091_p9 = pnand %p1090_p8, %p1084_p0 }
  0x60   : > { %818 = vmatpush3.xpose.msra.mxu0 %v242_v4 }
  0x61   : > { %819 = vmatprep.subr.mxu0 %v241_v5 }
  0x64   : > { %820 = vmatpush3.xpose.msra.mxu0 %v241_v5 }
  0x65   : > { %821 = vmatprep.subr.mxu0 %v240_v6 }
  0x68   : > { %822 = vmatpush3.xpose.msra.mxu0 %v240_v6 }
  0x69   : > { %823 = vmatprep.subr.mxu0 %v239_v7 }
  0x6c   : > { %824 = vmatpush3.xpose.msra.mxu0 %v239_v7 }
  0x6d   : > { %825 = vmatprep.subr.mxu0 %v238_v8 }
  0x70   : > { %826 = vmatpush3.xpose.msra.mxu0 %v238_v8 }
  0x71   : > { %827 = vmatprep.subr.mxu0 %v237_v9 }
  0x74   : > { %828 = vmatpush3.xpose.msra.mxu0 %v237_v9 }
  0x75   : > { %829 = vmatprep.subr.mxu0 %v236_v10 }
  0x78   : > { %830 = vmatpush3.xpose.msra.mxu0 %v236_v10 }
  0x79   : > { %831 = vmatprep.subr.mxu0 %v235_v11 }
  0x7c   : > { %832 = vmatpush3.xpose.msra.mxu0 %v235_v11 }
  0x7d   : > { %833 = vmatprep.subr.mxu0 %v234_v12 }
  0x80   : > { %834 = vmatpush3.xpose.msra.mxu0 %v234_v12 }
  0x81   : > { %835 = vmatprep.subr.mxu0 %v233_v13 }
  0x84   : > { %836 = vmatpush3.xpose.msra.mxu0 %v233_v13 }
  0x85   : > { %837 = vmatprep.subr.mxu0 %v232_v14 }
  0x88   : > { %838 = vmatpush3.xpose.msra.mxu0 %v232_v14 }
  0x89   : > { %839 = vmatprep.subr.mxu0 %v231_v15 }
  0x8c   : > { %840 = vmatpush3.xpose.msra.mxu0 %v231_v15 }
  0x8d   : > { %841 = vmatprep.subr.mxu0 %v230_v16 }
  0x90   : > { %842 = vmatpush3.xpose.msra.mxu0 %v230_v16 }
  0x91   : > { %902 = vmatprep.subr.mxu0 %v1157_v1 }
  0x93   : > { %844 = vmatmul.mubr.f32.vlgmr.msra.gmra.mxu0 %v1318_v17 }
  0x94   : > { %846 = vmatprep.mubr.f32.mxu0 %v1321_v18 }
  0x97   : > { %847 = vmatmul.mubr.f32.gmra.mxu0 %v1326_v19 }
  0x98   : > { %849 = vmatprep.mubr.f32.mxu0 %v1329_v20 }
  0x9b   : > { %850 = vmatmul.mubr.f32.gmra.mxu0 %v1334_v21 }
  0x9c   : > { %852 = vmatprep.mubr.f32.mxu0 %v1337_v22 }
  0x9f   : > { %853 = vmatmul.mubr.f32.gmra.mxu0 %v1342_v23 }
  0xa0   : > { %855 = vmatprep.mubr.f32.mxu0 %v1345_v24 }
  0xa3   : > { %856 = vmatmul.mubr.f32.gmra.mxu0 %v1350_v25 }
  0xa4   : > { %858 = vmatprep.mubr.f32.mxu0 %v1353_v26 }
  0xa7   : > { %859 = vmatmul.mubr.f32.gmra.mxu0 %v1358_v27 }
  0xa8   : > { %861 = vmatprep.mubr.f32.mxu0 %v1361_v28 }
  0xab   : > { %862 = vmatmul.mubr.f32.gmra.mxu0 %v1366_v29 }
  0xac   : > { %864 = vmatprep.mubr.f32.mxu0 %v1369_v30 }
  0xaf   : > { %865 = vmatmul.mubr.f32.gmra.mxu0 %v1374_v31 }
  0xb0   : > { %934 = vmatprep.mubr.msk.f32.mxu0 %vm1158_vm0, %v1157_v1 }
 0x153   : > { %v845_v32 = vpop.f32.mrf.mxu0 }
 0x154   : > { %v1404_v0 = vadd.f32 %v845_v32, %v740_v44 }
 0x155   : > { %v319_v33 = vpop.f32.mrf.mxu0 }
 0x156   : > { %v1398_v62 = vadd.f32 %v740_v44, %v319_v33 }
 0x157   : > { %v848_v34 = vpop.f32.mrf.mxu0 }
 0x158   : > { %v1400_v63 = vadd.f32 %v848_v34, %v740_v44 }
 0x159   : > { %v329_v35 = vpop.f32.mrf.mxu0 }
 0x15a   : > { %v1392_v60 = vadd.f32 %v740_v44, %v329_v35 }
 0x15b   : > { %v851_v36 = vpop.f32.mrf.mxu0 }
 0x15c   : > { %v1394_v61 = vadd.f32 %v851_v36, %v740_v44 }
 0x15d   : > { %v339_v37 = vpop.f32.mrf.mxu0 }
 0x15e   : > { %v1386_v58 = vadd.f32 %v740_v44, %v339_v37 }
 0x15f   : > { %v854_v38 = vpop.f32.mrf.mxu0 }
 0x160   : > { %v1388_v59 = vadd.f32 %v854_v38, %v740_v44 }
 0x161   : > { %v349_v39 = vpop.f32.mrf.mxu0 }
 0x162   : > { %v1383_v56 = vadd.f32 %v740_v44, %v349_v39 }
 0x163   : > { %v857_v40 = vpop.f32.mrf.mxu0 }
 0x164   : > { %v365_v57 = vadd.f32 %v857_v40, %v740_v44 }
 0x165   : > { %v359_v41 = vpop.f32.mrf.mxu0 }
 0x166   : > { %v1380_v54 = vadd.f32 %v740_v44, %v359_v41 }
 0x167   : > { %v860_v42 = vpop.f32.mrf.mxu0 }
 0x168   : > { %v375_v55 = vadd.f32 %v860_v42, %v740_v44 }
 0x169   : > { %v369_v43 = vpop.f32.mrf.mxu0 }
 0x16a   : > { %v370_v52 = vadd.f32 %v740_v44, %v369_v43 }
 0x16b   : > { %v863_v45 = vpop.f32.mrf.mxu0 }
 0x16c   : > { %v385_v46 = vadd.f32 %v863_v45, %v740_v44 }
 0x16d   : > { %v379_v47 = vpop.f32.mrf.mxu0 }
 0x16e   : > { %424 = vmax.xlane.f32.xlu1 %v385_v46  ;;  %v380_v49 = vadd.f32 %v740_v44, %v379_v47 }
 0x16f   : > { %v866_v48 = vpop.f32.mrf.mxu0 }
 0x170   : > { %v395_v50 = vadd.f32 %v866_v48, %v740_v44 }
 0x171   : > { %v389_v51 = vpop.f32.mrf.mxu0 }
 0x172   : > { %428 = vmax.xlane.f32.xlu0 %v395_v50  ;;  %422 = vmax.xlane.f32.xlu1 %v380_v49  ;;  %v390_v53 = vadd.f32 %v740_v44, %v389_v51 }
 0x176   : > { %426 = vmax.xlane.f32.xlu0 %v390_v53  ;;  %418 = vmax.xlane.f32.xlu1 %v370_v52 }
 0x17a   : > { %420 = vmax.xlane.f32.xlu0 %v375_v55  ;;  %414 = vmax.xlane.f32.xlu1 %v1380_v54 }
 0x17e   : > { %416 = vmax.xlane.f32.xlu0 %v365_v57  ;;  %410 = vmax.xlane.f32.xlu1 %v1383_v56 }
 0x182   : > { %412 = vmax.xlane.f32.xlu0 %v1388_v59  ;;  %406 = vmax.xlane.f32.xlu1 %v1386_v58 }
 0x186   : > { %408 = vmax.xlane.f32.xlu0 %v1394_v61  ;;  %402 = vmax.xlane.f32.xlu1 %v1392_v60 }
 0x18a   : > { %404 = vmax.xlane.f32.xlu0 %v1400_v63  ;;  %398 = vmax.xlane.f32.xlu1 %v1398_v62 }
 0x18e   : > { %400 = vmax.xlane.f32.xlu0 %v1404_v0 }
 0x1f7   : > { %v425_v2 = vpop.xlane.xlu1 %424 }
 0x1f8   : > { %v443_v6 = vsub.f32 %v385_v46, %v425_v2 }
 0x1fa   : > { %v472_v11 = vmul.f32 1.442695, %v443_v6 }
 0x1fb   : > { %v429_v4 = vpop.xlane.xlu0 %428  ;;  %v423_v8 = vpop.xlane.xlu1 %422 }
 0x1fc   : > { %v445_v5 = vsub.f32 %v395_v50, %v429_v4  ;;  %v442_v12 = vsub.f32 %v380_v49, %v423_v8 }
 0x1fe   : > { %v476_v7 = vmul.f32 1.442695, %v445_v5  ;;  %v470_v15 = vmul.f32 1.442695, %v442_v12 }
 0x1ff   : > { %v427_v9 = vpop.xlane.xlu0 %426  ;;  %v419_v32 = vpop.xlane.xlu1 %418 }
 0x200   : > { %995 = vpow2.f32 %v476_v7  ;;  %v444_v10 = vsub.f32 %v390_v53, %v427_v9  ;;  %v440_v33 = vsub.f32 %v370_v52, %v419_v32 }
 0x202   : > { %v474_v13 = vmul.f32 1.442695, %v444_v10  ;;  %v466_v37 = vmul.f32 1.442695, %v440_v33 }
 0x203   : > { %v421_v14 = vpop.xlane.xlu0 %420  ;;  %v415_v40 = vpop.xlane.xlu1 %414 }
 0x204   : > { %997 = vpow2.f32 %v474_v13  ;;  %v441_v16 = vsub.f32 %v375_v55, %v421_v14  ;;  %v438_v42 = vsub.f32 %v1380_v54, %v415_v40 }
 0x205   : > { %999 = vpow2.f32 %v472_v11 }
 0x206   : > { %1001 = vpow2.f32 %v470_v15  ;;  %v468_v34 = vmul.f32 1.442695, %v441_v16 }
 0x207   : > { %v417_v35 = vpop.xlane.xlu0 %416  ;;  %v411_v50 = vpop.xlane.xlu1 %410 }
 0x208   : > { %1003 = vpow2.f32 %v468_v34  ;;  %v439_v38 = vsub.f32 %v365_v57, %v417_v35 }
 0x209   : > { %1005 = vpow2.f32 %v466_v37  ;;  %v1159_v37 = vmov 1.0  }
 0x20a   : > { %v464_v43 = vmul.f32 1.442695, %v439_v38 }
 0x20b   : > { %v413_v46 = vpop.xlane.xlu0 %412 }
 0x20c   : > { %1007 = vpow2.f32 %v464_v43  ;;  %v437_v47 = vsub.f32 %v1388_v59, %v413_v46 }
 0x20d   : > { %v996_v36 = vpop.eup %995 }
 0x20e   : > { %868 = vmatpush3.xpose.msra.mxu1 %v996_v36  ;;  %v563_v39 = vmul.f32 %v996_v36, %v1374_v31  ;;  %v462_v31 = vmul.f32 1.442695, %v438_v42  ;;  %v460_v51 = vmul.f32 1.442695, %v437_v47 }
 0x20f   : > { %869 = vmatprep.subr.mxu1 %v1157_v1  ;;  %v409_v54 = vpop.xlane.xlu0 %408 }
 0x210   : > { %903 = vmatpush3.xpose.msra.mxu0 %v563_v39  ;;  %1009 = vpow2.f32 %v462_v31  ;;  %v435_v55 = vsub.f32 %v1394_v61, %v409_v54 }
 0x211   : > { %v998_v41 = vpop.eup %997  ;;  %904 = vmatprep.subr.mxu0 %v1157_v1  ;;  %1011 = vpow2.f32 %v460_v51 }
 0x212   : > { %870 = vmatpush3.xpose.msra.mxu1 %v998_v41  ;;  %v562_v44 = vmul.f32 %v998_v41, %v1369_v30  ;;  %v1000_v45 = vpop.eup %999  ;;  %v436_v30 = vsub.f32 %v1383_v56, %v411_v50  ;;  %v407_v56 = vpop.xlane.xlu1 %406  ;;  %v456_v2 = vmul.f32 1.442695, %v435_v55 }
 0x213   : > { %871 = vmatprep.subr.mxu1 %v1157_v1  ;;  %v561_v48 = vmul.f32 %v1000_v45, %v1366_v29  ;;  %v1002_v49 = vpop.eup %1001  ;;  %v405_v6 = vpop.xlane.xlu0 %404 }
 0x214   : > { %905 = vmatpush3.xpose.msra.mxu0 %v562_v44  ;;  %v560_v52 = vmul.f32 %v1002_v49, %v1361_v28  ;;  %v458_v29 = vmul.f32 1.442695, %v436_v30  ;;  %v434_v28 = vsub.f32 %v1386_v58, %v407_v56  ;;  %v433_v61 = vsub.f32 %v1400_v63, %v405_v6 }
 0x215   : > { %906 = vmatprep.subr.mxu0 %v1157_v1  ;;  %v1004_v53 = vpop.eup %1003 }
 0x216   : > { %872 = vmatpush3.xpose.msra.mxu1 %v1000_v45  ;;  %v559_v57 = vmul.f32 %v1004_v53, %v1358_v27  ;;  %v1006_v59 = vpop.eup %1005  ;;  %1013 = vpow2.f32 %v458_v29  ;;  %v454_v27 = vmul.f32 1.442695, %v434_v28  ;;  %v403_v58 = vpop.xlane.xlu1 %402  ;;  %v452_v9 = vmul.f32 1.442695, %v433_v61 }
 0x217   : > { %873 = vmatprep.subr.mxu1 %v1157_v1  ;;  %v558_v4 = vmul.f32 %v1006_v59, %v1353_v26  ;;  %1015 = vpow2.f32 %v456_v2  ;;  %v432_v26 = vsub.f32 %v1392_v60, %v403_v58  ;;  %v401_v12 = vpop.xlane.xlu0 %400 }
 0x218   : > { %907 = vmatpush3.xpose.msra.mxu0 %v561_v48  ;;  %1017 = vpow2.f32 %v454_v27  ;;  %v431_v63 = vsub.f32 %v1404_v0, %v401_v12 }
 0x219   : > { %908 = vmatprep.subr.mxu0 %v1157_v1  ;;  %v1008_v5 = vpop.eup %1007  ;;  %1019 = vpow2.f32 %v452_v9 }
 0x21a   : > { %874 = vmatpush3.xpose.msra.mxu1 %v1002_v49  ;;  %v557_v7 = vmul.f32 %v1008_v5, %v1350_v25  ;;  %v450_v25 = vmul.f32 1.442695, %v432_v26  ;;  %v399_v60 = vpop.xlane.xlu1 %398  ;;  %v448_v15 = vmul.f32 1.442695, %v431_v63 }
 0x21b   : > { %875 = vmatprep.subr.mxu1 %v1157_v1 }
 0x21c   : > { %909 = vmatpush3.xpose.msra.mxu0 %v560_v52  ;;  %1021 = vpow2.f32 %v450_v25 }
 0x21d   : > { %910 = vmatprep.subr.mxu0 %v1157_v1  ;;  %v1010_v8 = vpop.eup %1009  ;;  %1023 = vpow2.f32 %v448_v15 }
 0x21e   : > { %876 = vmatpush3.xpose.msra.mxu1 %v1004_v53  ;;  %v556_v10 = vmul.f32 %v1010_v8, %v1345_v24  ;;  %v1012_v11 = vpop.eup %1011  ;;  %v430_v24 = vsub.f32 %v1398_v62, %v399_v60 }
 0x21f   : > { %877 = vmatprep.subr.mxu1 %v1157_v1  ;;  %v555_v13 = vmul.f32 %v1012_v11, %v1342_v23 }
 0x220   : > { %911 = vmatpush3.xpose.msra.mxu0 %v559_v57  ;;  %v446_v23 = vmul.f32 1.442695, %v430_v24 }
 0x221   : > { %912 = vmatprep.subr.mxu0 %v1157_v1 }
 0x222   : > { %878 = vmatpush3.xpose.msra.mxu1 %v1006_v59  ;;  %1025 = vpow2.f32 %v446_v23 }
 0x223   : > { %879 = vmatprep.subr.mxu1 %v1157_v1  ;;  %v1014_v14 = vpop.eup %1013 }
 0x224   : > { %913 = vmatpush3.xpose.msra.mxu0 %v558_v4  ;;  %v554_v16 = vmul.f32 %v1014_v14, %v1337_v22  ;;  %v1016_v32 = vpop.eup %1015 }
 0x225   : > { %914 = vmatprep.subr.mxu0 %v1157_v1  ;;  %v553_v0 = vmul.f32 %v1016_v32, %v1334_v21  ;;  %v1018_v33 = vpop.eup %1017 }
 0x226   : > { %880 = vmatpush3.xpose.msra.mxu1 %v1008_v5  ;;  %v552_v22 = vmul.f32 %v1018_v33, %v1329_v20  ;;  %v1020_v62 = vpop.eup %1019 }
 0x227   : > { %881 = vmatprep.subr.mxu1 %v1157_v1  ;;  %v551_v34 = vmul.f32 %v1020_v62, %v1326_v19 }
 0x228   : > { %915 = vmatpush3.xpose.msra.mxu0 %v557_v7 }
 0x229   : > { %916 = vmatprep.subr.mxu0 %v1157_v1  ;;  %v1022_v21 = vpop.eup %1021 }
 0x22a   : > { %882 = vmatpush3.xpose.msra.mxu1 %v1010_v8  ;;  %v550_v35 = vmul.f32 %v1022_v21, %v1321_v18  ;;  %v1024_v36 = vpop.eup %1023 }
 0x22b   : > { %883 = vmatprep.subr.mxu1 %v1157_v1  ;;  %v549_v20 = vmul.f32 %v1024_v36, %v1318_v17 }
 0x22c   : > { %917 = vmatpush3.xpose.msra.mxu0 %v556_v10 }
 0x22d   : > { %918 = vmatprep.subr.mxu0 %v1157_v1 }
 0x22e   : > { %884 = vmatpush3.xpose.msra.mxu1 %v1012_v11 }
 0x22f   : > { %885 = vmatprep.subr.mxu1 %v1157_v1  ;;  %v1026_v19 = vpop.eup %1025 }
 0x230   : > { %919 = vmatpush3.xpose.msra.mxu0 %v555_v13  ;;  %v548_v18 = vmul.f32 %v1026_v19, %v1314_v3 }
 0x231   : > { %920 = vmatprep.subr.mxu0 %v1157_v1 }
 0x232   : > { %886 = vmatpush3.xpose.msra.mxu1 %v1014_v14 }
 0x233   : > { %887 = vmatprep.subr.mxu1 %v1157_v1 }
 0x234   : > { %921 = vmatpush3.xpose.msra.mxu0 %v554_v16 }
 0x235   : > { %922 = vmatprep.subr.mxu0 %v1157_v1 }
 0x236   : > { %888 = vmatpush3.xpose.msra.mxu1 %v1016_v32 }
 0x237   : > { %889 = vmatprep.subr.mxu1 %v1157_v1 }
 0x238   : > { %923 = vmatpush3.xpose.msra.mxu0 %v553_v0 }
 0x239   : > { %924 = vmatprep.subr.mxu0 %v1157_v1 }
 0x23a   : > { %890 = vmatpush3.xpose.msra.mxu1 %v1018_v33 }
 0x23b   : > { %891 = vmatprep.subr.mxu1 %v1157_v1 }
 0x23c   : > { %925 = vmatpush3.xpose.msra.mxu0 %v552_v22 }
 0x23d   : > { %926 = vmatprep.subr.mxu0 %v1157_v1 }
 0x23e   : > { %892 = vmatpush3.xpose.msra.mxu1 %v1020_v62 }
 0x23f   : > { %893 = vmatprep.subr.mxu1 %v1157_v1 }
 0x240   : > { %927 = vmatpush3.xpose.msra.mxu0 %v551_v34 }
 0x241   : > { %928 = vmatprep.subr.mxu0 %v1157_v1 }
 0x242   : > { %894 = vmatpush3.xpose.msra.mxu1 %v1022_v21 }
 0x243   : > { %895 = vmatprep.subr.mxu1 %v1157_v1 }
 0x244   : > { %929 = vmatpush3.xpose.msra.mxu0 %v550_v35 }
 0x245   : > { %930 = vmatprep.subr.mxu0 %v1157_v1 }
 0x246   : > { %896 = vmatpush3.xpose.msra.mxu1 %v1024_v36 }
 0x247   : > { %897 = vmatprep.subr.mxu1 %v1157_v1 }
 0x248   : > { %931 = vmatpush3.xpose.msra.mxu0 %v549_v20 }
 0x249   : > { %932 = vmatprep.subr.mxu0 %v1157_v1 }
 0x24a   : > { %898 = vmatpush3.xpose.msra.mxu1 %v1026_v19 }
 0x24c   : > { %933 = vmatpush3.xpose.msra.mxu0 %v548_v18 }
 0x24d   : > { %900 = vmatmul.mubr.f32.vlgmr.msra.gmra.mxu1 %v1159_v37 }
 0x24f   : > { %935 = vmatmul.mubr.f32.vlgmr.msra.gmra.mxu0 %v1159_v37 }
 0x30d   : > { %v544_v38 = vpop.f32.mrf.mxu1 }
 0x30e   : > { %1027 = vrcp.f32 %v544_v38 }
 0x30f   : > { %v901_v17 = vpop.f32.mrf.mxu1  ;;  %v630_v39 = vpop.f32.mrf.mxu0 }
 0x311   : > { %v936_v40 = vpop.f32.mrf.mxu0 }
 0x31b   : > { %v1028_v41 = vpop.eup %1027 }
 0x31c   : > { %v635_v42 = vmul.f32 %v1028_v41, %v630_v39 }
 0x31e   : > { %636 = vst [vmem:[%s208_s19] sm:$0x1] %v635_v42 }
 0x31f   : > { %1094 = shalt.err (!%p1091_p9)
}
 0x320   : > { %s1095_s27 = scalar_lea.hbm %s648_s9, 16  ;;  %s1099_s5 = scalar_lea.hbm %s1504_s3, 48 }
 0x321   : > { %p1096_p10 = scmp.ne.s32.totalorder %s648_s9, %s1095_s27  ;;  %p1100_p12 = scmp.lt.s32.totalorder %s648_s9, %s1504_s3 }
 0x322   : > { %p1101_p2 = scmp.lt.s32.totalorder %s1099_s5, %s1095_s27 }
 0x323   : > { %p1097_p6 = pnand %p1096_p10, %p1513_p13 }
 0x324   : > { %p1102_p1 = por %p1101_p2, %p1100_p12 }
 0x325   : > { %p1098_p11 = pneg %p1097_p6 }
 0x327   : > { %p1103_p4 = pnand %p1102_p1, %p1098_p11 }
 0x329   : > { %1106 = shalt.err (!%p1103_p4)
}
 0x32a   : > { %942 = dma.vmem_to_hbm [thread:$0]  (%p1513_p13), %s651_s29, 16, %s648_s9, %s638_s10  }
 0x32b PF: > { %p954_p5 = scmp.ge.s32.totalorder %s1149_s15, 2  ;;  %s662_s23 = sand.u32 1, %s1137_s12  }
 0x32c   : > { %p1514_p0 = scmp.ne.s32.totalorder %s1510_s25, 0  ;;  %s663_s26 = scalar_lea.sflag [#allocation4], %s662_s23 }
 0x32e   : > { %p949_p7 = pnand %p954_p5, %p1514_p0 }
 0x330   : > { %p950_p3 = pneg %p949_p7 }
 0x332   : > { %1132 = dma.done.wait (%p950_p3), %s663_s26, 16  }
 0x333   : > { %1134 = vsyncadd (%p950_p3), %s663_s26, 4294967280  ;;  %p17_p8 = scmp.ge.s32.totalorder %s1206_s18, 5   ;;  %s1515_s12 = smov %s1141_s13 }
 0x334   : > { %s1516_s13 = smov %s1145_s14  ;;  %s1517_s14 = smov %s1218_s21 }
 0x335   : > { %s1518_s15 = smov %s1206_s18  ;;  %19 = sbr.rel (!%p17_p8) target bundleno = 6 (0x6), region = 81 }
 0x33a   :  { %667 = vsyncpa [#allocation3], 1 }
 0x33b   :  { %669 = vsyncpa [#allocation3 + $0x1], 1 }
 0x33c   :  { %670 = vsyncpa [#allocation6], 1 }
 0x33d   :  { %671 = vsyncpa [#allocation4], 1 }
 0x33e   :  { %673 = vsyncpa [#allocation4 + $0x1], 1 }

// kernel: tpu_custom_call.1
= control target key start
LH: loop header
LB: loop body
LE: loop exit
PB: predicated region body
PF: predicated region fallthrough
CT: control target
= control target key end

     0   :  { %8 = vsyncpa [#allocation3], 0  ;;  %s1501_s0 = inlined_call_operand.hbm [shape: f32[300,128], index: 0, kind: input, shape index: {}]   ;;  %s1502_s1 = inlined_call_operand.hbm [shape: f32[128,128], index: 1, kind: input, shape index: {}]   ;;  %s1503_s2 = inlined_call_operand.vmem [shape: f32[1,128], index: 2, kind: input, shape index: {}]   ;;  %s1504_s3 = inlined_call_operand.hbm [shape: f32[1,384], index: 3, kind: output, shape index: {}]  }
   0x1   :  { %10 = vsyncpa [#allocation3 + $0x1], 0 }
   0x2   :  { %11 = vsyncpa [#allocation6], 0 }
   0x3   :  { %12 = vsyncpa [#allocation4], 0 }
   0x4   :  { %14 = vsyncpa [#allocation4 + $0x1], 0  ;;  %s1181_s12 = smov 0   ;;  %s1183_s13 = smov 0  }
   0x5   :  { %s1185_s14 = smov 0   ;;  %s1187_s15 = smov 0  }
   0x6 LB: > { %s1202_s16 = sadd.s32 4294967295, %s1149_s15   ;;  %s726_s17 = sadd.s32 4294967294, %s1149_s15   ;;  %s1149_s15 = sphi %s1187_s15, %s1518_s15   ;;  %s1145_s14 = sphi %s1185_s14, %s1517_s14   ;;  %s1141_s13 = sphi %s1183_s13, %s1516_s13   ;;  %s1137_s12 = sphi %s1181_s12, %s1515_s12  }
   0x7   : > { %s1206_s18 = sadd.s32 1, %s1149_s15   ;;  %s27_s19 = sadd.s32 1, %s1145_s14 }
   0x8   : > { %s24_s20 = ssub.s32 %s1149_s15, %s1206_s18  ;;  %p34_p0 = scmp.ne.s32.totalorder %s1145_s14, %s1141_s13 }
   0x9   : > { %p25_p1 = scmp.eq.s32.totalorder %s24_s20, 0  ;;  %p35_p2 = scmp.eq.s32.totalorder %s1149_s15, 0 }
   0xa   : > { %p40_p3 = scmp.ne.s32.totalorder %s1141_s13, %s1137_s12  ;;  %p41_p4 = scmp.eq.s32.totalorder %s1202_s16, 0 }
   0xb   : > { %s1218_s21 = scalar_select %p25_p1, %s1145_s14, %s27_s19  }
   0xc   : > { %p1220_p5 = por %p35_p2, %p34_p0  ;;  %p1226_p6 = por %p41_p4, %p40_p3 }
   0xd   : > { %p106_p7 = scmp.eq.s32.totalorder %s1202_s16, 2  ;;  %p112_p8 = scmp.eq.s32.totalorder %s726_s17, 2 }
   0xe   : > { %s1508_s23 = scalar_select %p1226_p6, 1, 0 }
   0xf   : > { %p727_p9 = scmp.ge.s32.totalorder %s1149_s15, 1  ;;  %p119_p10 = scmp.lt.s32.totalorder %s1149_s15, 4 }
  0x10   : > { %p1233_p11 = por %p106_p7, %p34_p0  ;;  %p1237_p12 = por %p112_p8, %p40_p3 }
  0x11   : > { %p1241_p13 = pnand %p727_p9, %p119_p10  ;;  %s1151_s27 = smov [#allocation5]  }
  0x12   : > { %s1509_s24 = scalar_select %p1233_p11, 1, 0 }
  0x13   : > { %s1510_s25 = scalar_select %p1237_p12, 1, 0 }
  0x14   : > { %p944_p1 = pneg %p1241_p13  ;;  %s131_s28 = sshll.u32 %s1151_s27, 4  ;;  %s132_s28 = int_to_ptr.vmem [resolvable:$true] %s131_s28 }
  0x15   : > { %s1040_s29 = scalar_lea.vmem %s132_s28, 2048  ;;  %p1048_p8 = scmp.lt.s32.totalorder %s132_s28, %s132_s28 }
  0x16   : > { %p945_p2 = pnand %p944_p1, %p41_p4  ;;  %p1041_p7 = scmp.ne.s32.totalorder %s132_s28, %s1040_s29 }
  0x17   : > { %p1049_p6 = scmp.lt.s32.totalorder %s1040_s29, %s1040_s29 }
  0x18   : > { %p1031_p0 = pneg %p945_p2 }
  0x19   : > { %p1050_p12 = por %p1049_p6, %p1048_p8 }
  0x1a   : > { %p1043_p11 = pnand %p1041_p7, %p1031_p0 }
  0x1c   : > { %p1044_p3 = pneg %p1043_p11 }
  0x1e   : > { %p1051_p9 = pnand %p1050_p12, %p1044_p3 }
  0x20   : > { %1054 = shalt.err (!%p1051_p9)
}
  0x21   : > { %s1152_s30 = smov 128   ;;  %s1153_s4 = smov 8  }
  0x22   : > { %947 = dma.hbm_to_vmem [thread:$0]  (!%p945_p2), %s1502_s1, 2048, %s132_s28, [#allocation6], %s1152_s30, %s1152_s30, %s1153_s4  }
  0x23   : > { %p729_p10 = scmp.ge.s32.totalorder %s1149_s15, 3 }
  0x25   : > { %144 = sbr.rel (%p729_p10) target bundleno = 74 (0x4a), region = 24 }
  0x2a   : > { %147 = sbr.rel (!%p1220_p5) target bundleno = 74 (0x4a), region = 28  ;;  %s148_s7 = sand.u32 (%p1220_p5), 1, %s1145_s14  }
  0x2b   : > { %s731_s8 = sshll.u32 (%p1220_p5), %s1149_s15, 4  ;;  %s730_s9 = sshll.u32 (%p1220_p5), %s148_s7, 7 }
  0x2c   : > { %s154_s10 = ssub.s32 (%p1220_p5), 38, %s731_s8  ;;  %s1260_s19 = scalar_lea.sflag (%p1220_p5), [#allocation3], %s148_s7 }
  0x2d   : > { %p155_p6 = scmp.lt.s32.totalorder (%p1220_p5), %s154_s10, 16  ;;  %s152_s20 = scalar_lea.vmem (%p1220_p5), [#allocation2], %s730_s9 }
  0x2f   : > { %s1520_s10 = smov (!%p155_p6, %s154_s10), 16 }
  0x30   : > { %s1257_s11 = sshll.u32 %s1520_s10, 7 }
  0x31   : > { %s159_s17 = ssub.s32 2048, %s1257_s11 }
  0x32   : > { %160 = vsyncadd %s1260_s19, %s159_s17  ;;  %p733_p5 = scmp.ne.s32.totalorder %s1257_s11, 0  ;;  %s744_s22 = sshll.u32 %s1149_s15, 11 }
  0x33   : > { %s1268_s29 = scalar_lea.hbm %s1501_s0, %s744_s22  ;;  %s165_s30 = sshll.u32 %s152_s20, 4  ;;  %s1270_s30 = int_to_ptr.vmem [resolvable:$true] %s165_s30 }
  0x34   : > { %s1055_s4 = scalar_lea.hbm %s1268_s29, %s1257_s11  ;;  %s1059_s7 = scalar_lea.hbm %s1501_s0, 4864 }
  0x35   : > { %p1056_p11 = scmp.ne.s32.totalorder %s1268_s29, %s1055_s4  ;;  %p1060_p2 = scmp.lt.s32.totalorder %s1268_s29, %s1501_s0 }
  0x36   : > { %p1061_p0 = scmp.lt.s32.totalorder %s1059_s7, %s1055_s4 }
  0x37   : > { %p1057_p12 = pnand %p1056_p11, %p733_p5 }
  0x38   : > { %p1062_p7 = por %p1061_p0, %p1060_p2 }
  0x39   : > { %p1058_p1 = pneg %p1057_p12 }
  0x3b   : > { %p1063_p3 = pnand %p1062_p7, %p1058_p1 }
  0x3d   : > { %1066 = shalt.err (!%p1063_p3)
}
  0x3e   : > { %s1067_s10 = scalar_lea.vmem %s1270_s30, %s1257_s11  ;;  %s1154_s17 = smov [#allocation2]  }
  0x3f   : > { %p1068_p8 = scmp.ne.s32.totalorder %s1270_s30, %s1067_s10  ;;  %s1071_s20 = sshll.u32 %s1154_s17, 4  ;;  %s1072_s20 = int_to_ptr.vmem [resolvable:$false] %s1071_s20 }
  0x40   : > { %s1073_s22 = scalar_lea.vmem %s1072_s20, 4096  ;;  %p1074_p6 = scmp.lt.s32.totalorder %s1270_s30, %s1072_s20 }
  0x41   : > { %p1069_p9 = pnand %p1068_p8, %p733_p5  ;;  %p1075_p11 = scmp.lt.s32.totalorder %s1073_s22, %s1067_s10 }
  0x43   : > { %p1070_p10 = pneg %p1069_p9  ;;  %p1076_p12 = por %p1075_p11, %p1074_p6 }
  0x45   : > { %p1077_p2 = pnand %p1076_p12, %p1070_p10 }
  0x47   : > { %1080 = shalt.err (!%p1077_p2)
}
  0x48   : > { %s1155_s27 = smov 128   ;;  %s1156_s28 = smov 8  }
  0x49   : > { %171 = dma.hbm_to_vmem [thread:$0]  (%p733_p5), %s1268_s29, %s1257_s11, %s1270_s30, %s1260_s19, %s1155_s27, %s1155_s27, %s1156_s28  }
  0x4a PF: > { %177 = sbr.rel (%p1241_p13) target bundleno = 811 (0x32b), region = 32  ;;  %s1299_s4 = sand.u32 (!%p1241_p13), 1, %s1141_s13  }
  0x4b   : > { %s738_s5 = sshll.u32 (!%p1241_p13), %s1299_s4, 7  ;;  %s180_s6 = scalar_lea.sflag (!%p1241_p13), [#allocation3], %s1299_s4 }
  0x4c   : > { %s1303_s7 = scalar_lea.vmem (!%p1241_p13), [#allocation2], %s738_s5  ;;  %p1512_p1 = scmp.ne.s32.totalorder (!%p1241_p13), %s1508_s23, 0 }
  0x4f   : > { %1124 = dma.done.wait (%p1512_p1), %s180_s6, 2048  }
  0x50   : > { %1126 = vsyncadd (%p1512_p1), %s180_s6, 4294965248 }
  0x51   : > { %1128 = dma.done.wait (%p41_p4), [#allocation6], 2048  }
  0x52   : > { %1130 = vsyncadd (%p41_p4), [#allocation6], 4294965248  ;;  %v245_v0 = vld [vmem:[#allocation5 + $0x78] sm:$0xff]  ;;  %v244_v1 = vld [vmem:[#allocation5 + $0x70] sm:$0xff]  ;;  %vm1158_vm0 = vmmov 0   ;;  %s741_s11 = sshll.u32 %s1202_s16, 4 }
  0x53   : > { %811 = vmatprep.subr.mxu0 %v245_v0  ;;  %v243_v2 = vld [vmem:[#allocation5 + $0x68] sm:$0xff]  ;;  %v1314_v3 = vld [vmem:[%s1303_s7] sm:$0xff]  ;;  %v241_v5 = vld [vmem:[#allocation5 + $0x58] sm:$0xff]  ;;  %s208_s19 = scalar_lea.vmem [#allocation7], %s1299_s4  ;;  %s648_s9 = scalar_lea.hbm %s1504_s3, %s741_s11 }
  0x54   : > { %812 = vmatpush3.xpose.msra.mxu0 %v245_v0  ;;  %843 = vmatprep.mubr.f32.mxu0 %v1314_v3  ;;  %v242_v4 = vld [vmem:[#allocation5 + $0x60] sm:$0xff]  ;;  %v240_v6 = vld [vmem:[#allocation5 + $0x50] sm:$0xff]  ;;  %v239_v7 = vld [vmem:[#allocation5 + $0x48] sm:$0xff]  ;;  %s650_s29 = sshll.u32 %s208_s19, 4  ;;  %s638_s10 = scalar_lea.sflag [#allocation4], %s1299_s4  ;;  %s651_s29 = int_to_ptr.vmem [resolvable:$true] %s650_s29 }
  0x55   : > { %813 = vmatprep.subr.mxu0 %v244_v1  ;;  %v238_v8 = vld [vmem:[#allocation5 + $0x40] sm:$0xff]  ;;  %v237_v9 = vld [vmem:[#allocation5 + $0x38] sm:$0xff]  ;;  %v236_v10 = vld [vmem:[#allocation5 + $0x30] sm:$0xff]  ;;  %s1081_s17 = scalar_lea.vmem %s651_s29, 16  ;;  %p1513_p13 = scmp.ne.s32.totalorder %s1509_s24, 0 }
  0x56   : > { %v235_v11 = vld [vmem:[#allocation5 + $0x28] sm:$0xff]  ;;  %v234_v12 = vld [vmem:[#allocation5 + $0x20] sm:$0xff]  ;;  %v233_v13 = vld [vmem:[#allocation5 + $0x18] sm:$0xff]  ;;  %p1082_p4 = scmp.ne.s32.totalorder %s651_s29, %s1081_s17  ;;  %s1160_s20 = smov [#allocation7]  }
  0x57   : > { %v232_v14 = vld [vmem:[#allocation5 + $0x10] sm:$0xff]  ;;  %v231_v15 = vld [vmem:[#allocation5 + $0x8] sm:$0xff]  ;;  %v230_v16 = vld [vmem:[#allocation5] sm:$0xff]  ;;  %s1085_s22 = sshll.u32 %s1160_s20, 4  ;;  %s1086_s22 = int_to_ptr.vmem [resolvable:$false] %s1085_s22 }
  0x58   : > { %814 = vmatpush3.xpose.msra.mxu0 %v244_v1  ;;  %v1318_v17 = vld [vmem:[%s1303_s7 + $0x8] sm:$0xff]  ;;  %v1321_v18 = vld [vmem:[%s1303_s7 + $0x10] sm:$0xff]  ;;  %v1326_v19 = vld [vmem:[%s1303_s7 + $0x18] sm:$0xff]  ;;  %v1157_v1 = vmov 0.0   ;;  %p1083_p5 = pnand %p1082_p4, %p1513_p13  ;;  %s1087_s16 = scalar_lea.vmem %s1086_s22, 32 }
  0x59   : > { %815 = vmatprep.subr.mxu0 %v243_v2  ;;  %v1329_v20 = vld [vmem:[%s1303_s7 + $0x20] sm:$0xff]  ;;  %v1334_v21 = vld [vmem:[%s1303_s7 + $0x28] sm:$0xff]  ;;  %v1337_v22 = vld [vmem:[%s1303_s7 + $0x30] sm:$0xff]  ;;  %867 = vmatprep.subr.mxu1 %v1157_v1  ;;  %p1088_p7 = scmp.lt.s32.totalorder %s651_s29, %s1086_s22  ;;  %p1089_p3 = scmp.lt.s32.totalorder %s1087_s16, %s1081_s17 }
  0x5a   : > { %v1342_v23 = vld [vmem:[%s1303_s7 + $0x38] sm:$0xff]  ;;  %v1345_v24 = vld [vmem:[%s1303_s7 + $0x40] sm:$0xff]  ;;  %v1350_v25 = vld [vmem:[%s1303_s7 + $0x48] sm:$0xff]  ;;  %899 = vmatprep.mubr.msk.f32.mxu1 %vm1158_vm0, %v1157_v1  ;;  %p1084_p0 = pneg %p1083_p5 }
  0x5b   : > { %v1353_v26 = vld [vmem:[%s1303_s7 + $0x50] sm:$0xff]  ;;  %v1358_v27 = vld [vmem:[%s1303_s7 + $0x58] sm:$0xff]  ;;  %v1361_v28 = vld [vmem:[%s1303_s7 + $0x60] sm:$0xff]  ;;  %p1090_p8 = por %p1089_p3, %p1088_p7 }
  0x5c   : > { %816 = vmatpush3.xpose.msra.mxu0 %v243_v2  ;;  %v1366_v29 = vld [vmem:[%s1303_s7 + $0x68] sm:$0xff]  ;;  %v1369_v30 = vld [vmem:[%s1303_s7 + $0x70] sm:$0xff]  ;;  %v1374_v31 = vld [vmem:[%s1303_s7 + $0x78] sm:$0xff] }
  0x5d   : > { %817 = vmatprep.subr.mxu0 %v242_v4  ;;  %v740_v44 = vld [vmem:[%s1503_s2] ss:$0 sm:$0xff]  ;;  %p1091_p9 = pnand %p1090_p8, %p1084_p0 }
  0x60   : > { %818 = vmatpush3.xpose.msra.mxu0 %v242_v4 }
  0x61   : > { %819 = vmatprep.subr.mxu0 %v241_v5 }
  0x64   : > { %820 = vmatpush3.xpose.msra.mxu0 %v241_v5 }
  0x65   : > { %821 = vmatprep.subr.mxu0 %v240_v6 }
  0x68   : > { %822 = vmatpush3.xpose.msra.mxu0 %v240_v6 }
  0x69   : > { %823 = vmatprep.subr.mxu0 %v239_v7 }
  0x6c   : > { %824 = vmatpush3.xpose.msra.mxu0 %v239_v7 }
  0x6d   : > { %825 = vmatprep.subr.mxu0 %v238_v8 }
  0x70   : > { %826 = vmatpush3.xpose.msra.mxu0 %v238_v8 }
  0x71   : > { %827 = vmatprep.subr.mxu0 %v237_v9 }
  0x74   : > { %828 = vmatpush3.xpose.msra.mxu0 %v237_v9 }
  0x75   : > { %829 = vmatprep.subr.mxu0 %v236_v10 }
  0x78   : > { %830 = vmatpush3.xpose.msra.mxu0 %v236_v10 }
  0x79   : > { %831 = vmatprep.subr.mxu0 %v235_v11 }
  0x7c   : > { %832 = vmatpush3.xpose.msra.mxu0 %v235_v11 }
  0x7d   : > { %833 = vmatprep.subr.mxu0 %v234_v12 }
  0x80   : > { %834 = vmatpush3.xpose.msra.mxu0 %v234_v12 }
  0x81   : > { %835 = vmatprep.subr.mxu0 %v233_v13 }
  0x84   : > { %836 = vmatpush3.xpose.msra.mxu0 %v233_v13 }
  0x85   : > { %837 = vmatprep.subr.mxu0 %v232_v14 }
  0x88   : > { %838 = vmatpush3.xpose.msra.mxu0 %v232_v14 }
  0x89   : > { %839 = vmatprep.subr.mxu0 %v231_v15 }
  0x8c   : > { %840 = vmatpush3.xpose.msra.mxu0 %v231_v15 }
  0x8d   : > { %841 = vmatprep.subr.mxu0 %v230_v16 }
  0x90   : > { %842 = vmatpush3.xpose.msra.mxu0 %v230_v16 }
  0x91   : > { %902 = vmatprep.subr.mxu0 %v1157_v1 }
  0x93   : > { %844 = vmatmul.mubr.f32.vlgmr.msra.gmra.mxu0 %v1318_v17 }
  0x94   : > { %846 = vmatprep.mubr.f32.mxu0 %v1321_v18 }
  0x97   : > { %847 = vmatmul.mubr.f32.gmra.mxu0 %v1326_v19 }
  0x98   : > { %849 = vmatprep.mubr.f32.mxu0 %v1329_v20 }
  0x9b   : > { %850 = vmatmul.mubr.f32.gmra.mxu0 %v1334_v21 }
  0x9c   : > { %852 = vmatprep.mubr.f32.mxu0 %v1337_v22 }
  0x9f   : > { %853 = vmatmul.mubr.f32.gmra.mxu0 %v1342_v23 }
  0xa0   : > { %855 = vmatprep.mubr.f32.mxu0 %v1345_v24 }
  0xa3   : > { %856 = vmatmul.mubr.f32.gmra.mxu0 %v1350_v25 }
  0xa4   : > { %858 = vmatprep.mubr.f32.mxu0 %v1353_v26 }
  0xa7   : > { %859 = vmatmul.mubr.f32.gmra.mxu0 %v1358_v27 }
  0xa8   : > { %861 = vmatprep.mubr.f32.mxu0 %v1361_v28 }
  0xab   : > { %862 = vmatmul.mubr.f32.gmra.mxu0 %v1366_v29 }
  0xac   : > { %864 = vmatprep.mubr.f32.mxu0 %v1369_v30 }
  0xaf   : > { %865 = vmatmul.mubr.f32.gmra.mxu0 %v1374_v31 }
  0xb0   : > { %934 = vmatprep.mubr.msk.f32.mxu0 %vm1158_vm0, %v1157_v1 }
 0x153   : > { %v845_v32 = vpop.f32.mrf.mxu0 }
 0x154   : > { %v1404_v0 = vadd.f32 %v845_v32, %v740_v44 }
 0x155   : > { %v319_v33 = vpop.f32.mrf.mxu0 }
 0x156   : > { %v1398_v62 = vadd.f32 %v740_v44, %v319_v33 }
 0x157   : > { %v848_v34 = vpop.f32.mrf.mxu0 }
 0x158   : > { %v1400_v63 = vadd.f32 %v848_v34, %v740_v44 }
 0x159   : > { %v329_v35 = vpop.f32.mrf.mxu0 }
 0x15a   : > { %v1392_v60 = vadd.f32 %v740_v44, %v329_v35 }
 0x15b   : > { %v851_v36 = vpop.f32.mrf.mxu0 }
 0x15c   : > { %v1394_v61 = vadd.f32 %v851_v36, %v740_v44 }
 0x15d   : > { %v339_v37 = vpop.f32.mrf.mxu0 }
 0x15e   : > { %v1386_v58 = vadd.f32 %v740_v44, %v339_v37 }
 0x15f   : > { %v854_v38 = vpop.f32.mrf.mxu0 }
 0x160   : > { %v1388_v59 = vadd.f32 %v854_v38, %v740_v44 }
 0x161   : > { %v349_v39 = vpop.f32.mrf.mxu0 }
 0x162   : > { %v1383_v56 = vadd.f32 %v740_v44, %v349_v39 }
 0x163   : > { %v857_v40 = vpop.f32.mrf.mxu0 }
 0x164   : > { %v365_v57 = vadd.f32 %v857_v40, %v740_v44 }
 0x165   : > { %v359_v41 = vpop.f32.mrf.mxu0 }
 0x166   : > { %v1380_v54 = vadd.f32 %v740_v44, %v359_v41 }
 0x167   : > { %v860_v42 = vpop.f32.mrf.mxu0 }
 0x168   : > { %v375_v55 = vadd.f32 %v860_v42, %v740_v44 }
 0x169   : > { %v369_v43 = vpop.f32.mrf.mxu0 }
 0x16a   : > { %v370_v52 = vadd.f32 %v740_v44, %v369_v43 }
 0x16b   : > { %v863_v45 = vpop.f32.mrf.mxu0 }
 0x16c   : > { %v385_v46 = vadd.f32 %v863_v45, %v740_v44 }
 0x16d   : > { %v379_v47 = vpop.f32.mrf.mxu0 }
 0x16e   : > { %424 = vmax.xlane.f32.xlu1 %v385_v46  ;;  %v380_v49 = vadd.f32 %v740_v44, %v379_v47 }
 0x16f   : > { %v866_v48 = vpop.f32.mrf.mxu0 }
 0x170   : > { %v395_v50 = vadd.f32 %v866_v48, %v740_v44 }
 0x171   : > { %v389_v51 = vpop.f32.mrf.mxu0 }
 0x172   : > { %428 = vmax.xlane.f32.xlu0 %v395_v50  ;;  %422 = vmax.xlane.f32.xlu1 %v380_v49  ;;  %v390_v53 = vadd.f32 %v740_v44, %v389_v51 }
 0x176   : > { %426 = vmax.xlane.f32.xlu0 %v390_v53  ;;  %418 = vmax.xlane.f32.xlu1 %v370_v52 }
 0x17a   : > { %420 = vmax.xlane.f32.xlu0 %v375_v55  ;;  %414 = vmax.xlane.f32.xlu1 %v1380_v54 }
 0x17e   : > { %416 = vmax.xlane.f32.xlu0 %v365_v57  ;;  %410 = vmax.xlane.f32.xlu1 %v1383_v56 }
 0x182   : > { %412 = vmax.xlane.f32.xlu0 %v1388_v59  ;;  %406 = vmax.xlane.f32.xlu1 %v1386_v58 }
 0x186   : > { %408 = vmax.xlane.f32.xlu0 %v1394_v61  ;;  %402 = vmax.xlane.f32.xlu1 %v1392_v60 }
 0x18a   : > { %404 = vmax.xlane.f32.xlu0 %v1400_v63  ;;  %398 = vmax.xlane.f32.xlu1 %v1398_v62 }
 0x18e   : > { %400 = vmax.xlane.f32.xlu0 %v1404_v0 }
 0x1f7   : > { %v425_v2 = vpop.xlane.xlu1 %424 }
 0x1f8   : > { %v443_v6 = vsub.f32 %v385_v46, %v425_v2 }
 0x1fa   : > { %v472_v11 = vmul.f32 1.442695, %v443_v6 }
 0x1fb   : > { %v429_v4 = vpop.xlane.xlu0 %428  ;;  %v423_v8 = vpop.xlane.xlu1 %422 }
 0x1fc   : > { %v445_v5 = vsub.f32 %v395_v50, %v429_v4  ;;  %v442_v12 = vsub.f32 %v380_v49, %v423_v8 }
 0x1fe   : > { %v476_v7 = vmul.f32 1.442695, %v445_v5  ;;  %v470_v15 = vmul.f32 1.442695, %v442_v12 }
 0x1ff   : > { %v427_v9 = vpop.xlane.xlu0 %426  ;;  %v419_v32 = vpop.xlane.xlu1 %418 }
 0x200   : > { %995 = vpow2.f32 %v476_v7  ;;  %v444_v10 = vsub.f32 %v390_v53, %v427_v9  ;;  %v440_v33 = vsub.f32 %v370_v52, %v419_v32 }
 0x202   : > { %v474_v13 = vmul.f32 1.442695, %v444_v10  ;;  %v466_v37 = vmul.f32 1.442695, %v440_v33 }
 0x203   : > { %v421_v14 = vpop.xlane.xlu0 %420  ;;  %v415_v40 = vpop.xlane.xlu1 %414 }
 0x204   : > { %997 = vpow2.f32 %v474_v13  ;;  %v441_v16 = vsub.f32 %v375_v55, %v421_v14  ;;  %v438_v42 = vsub.f32 %v1380_v54, %v415_v40 }
 0x205   : > { %999 = vpow2.f32 %v472_v11 }
 0x206   : > { %1001 = vpow2.f32 %v470_v15  ;;  %v468_v34 = vmul.f32 1.442695, %v441_v16 }
 0x207   : > { %v417_v35 = vpop.xlane.xlu0 %416  ;;  %v411_v50 = vpop.xlane.xlu1 %410 }
 0x208   : > { %1003 = vpow2.f32 %v468_v34  ;;  %v439_v38 = vsub.f32 %v365_v57, %v417_v35 }
 0x209   : > { %1005 = vpow2.f32 %v466_v37  ;;  %v1159_v37 = vmov 1.0  }
 0x20a   : > { %v464_v43 = vmul.f32 1.442695, %v439_v38 }
 0x20b   : > { %v413_v46 = vpop.xlane.xlu0 %412 }
 0x20c   : > { %1007 = vpow2.f32 %v464_v43  ;;  %v437_v47 = vsub.f32 %v1388_v59, %v413_v46 }
 0x20d   : > { %v996_v36 = vpop.eup %995 }
 0x20e   : > { %868 = vmatpush3.xpose.msra.mxu1 %v996_v36  ;;  %v563_v39 = vmul.f32 %v996_v36, %v1374_v31  ;;  %v462_v31 = vmul.f32 1.442695, %v438_v42  ;;  %v460_v51 = vmul.f32 1.442695, %v437_v47 }
 0x20f   : > { %869 = vmatprep.subr.mxu1 %v1157_v1  ;;  %v409_v54 = vpop.xlane.xlu0 %408 }
 0x210   : > { %903 = vmatpush3.xpose.msra.mxu0 %v563_v39  ;;  %1009 = vpow2.f32 %v462_v31  ;;  %v435_v55 = vsub.f32 %v1394_v61, %v409_v54 }
 0x211   : > { %v998_v41 = vpop.eup %997  ;;  %904 = vmatprep.subr.mxu0 %v1157_v1  ;;  %1011 = vpow2.f32 %v460_v51 }
 0x212   : > { %870 = vmatpush3.xpose.msra.mxu1 %v998_v41  ;;  %v562_v44 = vmul.f32 %v998_v41, %v1369_v30  ;;  %v1000_v45 = vpop.eup %999  ;;  %v436_v30 = vsub.f32 %v1383_v56, %v411_v50  ;;  %v407_v56 = vpop.xlane.xlu1 %406  ;;  %v456_v2 = vmul.f32 1.442695, %v435_v55 }
 0x213   : > { %871 = vmatprep.subr.mxu1 %v1157_v1  ;;  %v561_v48 = vmul.f32 %v1000_v45, %v1366_v29  ;;  %v1002_v49 = vpop.eup %1001  ;;  %v405_v6 = vpop.xlane.xlu0 %404 }
 0x214   : > { %905 = vmatpush3.xpose.msra.mxu0 %v562_v44  ;;  %v560_v52 = vmul.f32 %v1002_v49, %v1361_v28  ;;  %v458_v29 = vmul.f32 1.442695, %v436_v30  ;;  %v434_v28 = vsub.f32 %v1386_v58, %v407_v56  ;;  %v433_v61 = vsub.f32 %v1400_v63, %v405_v6 }
 0x215   : > { %906 = vmatprep.subr.mxu0 %v1157_v1  ;;  %v1004_v53 = vpop.eup %1003 }
 0x216   : > { %872 = vmatpush3.xpose.msra.mxu1 %v1000_v45  ;;  %v559_v57 = vmul.f32 %v1004_v53, %v1358_v27  ;;  %v1006_v59 = vpop.eup %1005  ;;  %1013 = vpow2.f32 %v458_v29  ;;  %v454_v27 = vmul.f32 1.442695, %v434_v28  ;;  %v403_v58 = vpop.xlane.xlu1 %402  ;;  %v452_v9 = vmul.f32 1.442695, %v433_v61 }
 0x217   : > { %873 = vmatprep.subr.mxu1 %v1157_v1  ;;  %v558_v4 = vmul.f32 %v1006_v59, %v1353_v26  ;;  %1015 = vpow2.f32 %v456_v2  ;;  %v432_v26 = vsub.f32 %v1392_v60, %v403_v58  ;;  %v401_v12 = vpop.xlane.xlu0 %400 }
 0x218   : > { %907 = vmatpush3.xpose.msra.mxu0 %v561_v48  ;;  %1017 = vpow2.f32 %v454_v27  ;;  %v431_v63 = vsub.f32 %v1404_v0, %v401_v12 }
 0x219   : > { %908 = vmatprep.subr.mxu0 %v1157_v1  ;;  %v1008_v5 = vpop.eup %1007  ;;  %1019 = vpow2.f32 %v452_v9 }
 0x21a   : > { %874 = vmatpush3.xpose.msra.mxu1 %v1002_v49  ;;  %v557_v7 = vmul.f32 %v1008_v5, %v1350_v25  ;;  %v450_v25 = vmul.f32 1.442695, %v432_v26  ;;  %v399_v60 = vpop.xlane.xlu1 %398  ;;  %v448_v15 = vmul.f32 1.442695, %v431_v63 }
 0x21b   : > { %875 = vmatprep.subr.mxu1 %v1157_v1 }
 0x21c   : > { %909 = vmatpush3.xpose.msra.mxu0 %v560_v52  ;;  %1021 = vpow2.f32 %v450_v25 }
 0x21d   : > { %910 = vmatprep.subr.mxu0 %v1157_v1  ;;  %v1010_v8 = vpop.eup %1009  ;;  %1023 = vpow2.f32 %v448_v15 }
 0x21e   : > { %876 = vmatpush3.xpose.msra.mxu1 %v1004_v53  ;;  %v556_v10 = vmul.f32 %v1010_v8, %v1345_v24  ;;  %v1012_v11 = vpop.eup %1011  ;;  %v430_v24 = vsub.f32 %v1398_v62, %v399_v60 }
 0x21f   : > { %877 = vmatprep.subr.mxu1 %v1157_v1  ;;  %v555_v13 = vmul.f32 %v1012_v11, %v1342_v23 }
 0x220   : > { %911 = vmatpush3.xpose.msra.mxu0 %v559_v57  ;;  %v446_v23 = vmul.f32 1.442695, %v430_v24 }
 0x221   : > { %912 = vmatprep.subr.mxu0 %v1157_v1 }
 0x222   : > { %878 = vmatpush3.xpose.msra.mxu1 %v1006_v59  ;;  %1025 = vpow2.f32 %v446_v23 }
 0x223   : > { %879 = vmatprep.subr.mxu1 %v1157_v1  ;;  %v1014_v14 = vpop.eup %1013 }
 0x224   : > { %913 = vmatpush3.xpose.msra.mxu0 %v558_v4  ;;  %v554_v16 = vmul.f32 %v1014_v14, %v1337_v22  ;;  %v1016_v32 = vpop.eup %1015 }
 0x225   : > { %914 = vmatprep.subr.mxu0 %v1157_v1  ;;  %v553_v0 = vmul.f32 %v1016_v32, %v1334_v21  ;;  %v1018_v33 = vpop.eup %1017 }
 0x226   : > { %880 = vmatpush3.xpose.msra.mxu1 %v1008_v5  ;;  %v552_v22 = vmul.f32 %v1018_v33, %v1329_v20  ;;  %v1020_v62 = vpop.eup %1019 }
 0x227   : > { %881 = vmatprep.subr.mxu1 %v1157_v1  ;;  %v551_v34 = vmul.f32 %v1020_v62, %v1326_v19 }
 0x228   : > { %915 = vmatpush3.xpose.msra.mxu0 %v557_v7 }
 0x229   : > { %916 = vmatprep.subr.mxu0 %v1157_v1  ;;  %v1022_v21 = vpop.eup %1021 }
 0x22a   : > { %882 = vmatpush3.xpose.msra.mxu1 %v1010_v8  ;;  %v550_v35 = vmul.f32 %v1022_v21, %v1321_v18  ;;  %v1024_v36 = vpop.eup %1023 }
 0x22b   : > { %883 = vmatprep.subr.mxu1 %v1157_v1  ;;  %v549_v20 = vmul.f32 %v1024_v36, %v1318_v17 }
 0x22c   : > { %917 = vmatpush3.xpose.msra.mxu0 %v556_v10 }
 0x22d   : > { %918 = vmatprep.subr.mxu0 %v1157_v1 }
 0x22e   : > { %884 = vmatpush3.xpose.msra.mxu1 %v1012_v11 }
 0x22f   : > { %885 = vmatprep.subr.mxu1 %v1157_v1  ;;  %v1026_v19 = vpop.eup %1025 }
 0x230   : > { %919 = vmatpush3.xpose.msra.mxu0 %v555_v13  ;;  %v548_v18 = vmul.f32 %v1026_v19, %v1314_v3 }
 0x231   : > { %920 = vmatprep.subr.mxu0 %v1157_v1 }
 0x232   : > { %886 = vmatpush3.xpose.msra.mxu1 %v1014_v14 }
 0x233   : > { %887 = vmatprep.subr.mxu1 %v1157_v1 }
 0x234   : > { %921 = vmatpush3.xpose.msra.mxu0 %v554_v16 }
 0x235   : > { %922 = vmatprep.subr.mxu0 %v1157_v1 }
 0x236   : > { %888 = vmatpush3.xpose.msra.mxu1 %v1016_v32 }
 0x237   : > { %889 = vmatprep.subr.mxu1 %v1157_v1 }
 0x238   : > { %923 = vmatpush3.xpose.msra.mxu0 %v553_v0 }
 0x239   : > { %924 = vmatprep.subr.mxu0 %v1157_v1 }
 0x23a   : > { %890 = vmatpush3.xpose.msra.mxu1 %v1018_v33 }
 0x23b   : > { %891 = vmatprep.subr.mxu1 %v1157_v1 }
 0x23c   : > { %925 = vmatpush3.xpose.msra.mxu0 %v552_v22 }
 0x23d   : > { %926 = vmatprep.subr.mxu0 %v1157_v1 }
 0x23e   : > { %892 = vmatpush3.xpose.msra.mxu1 %v1020_v62 }
 0x23f   : > { %893 = vmatprep.subr.mxu1 %v1157_v1 }
 0x240   : > { %927 = vmatpush3.xpose.msra.mxu0 %v551_v34 }
 0x241   : > { %928 = vmatprep.subr.mxu0 %v1157_v1 }
 0x242   : > { %894 = vmatpush3.xpose.msra.mxu1 %v1022_v21 }
 0x243   : > { %895 = vmatprep.subr.mxu1 %v1157_v1 }
 0x244   : > { %929 = vmatpush3.xpose.msra.mxu0 %v550_v35 }
 0x245   : > { %930 = vmatprep.subr.mxu0 %v1157_v1 }
 0x246   : > { %896 = vmatpush3.xpose.msra.mxu1 %v1024_v36 }
 0x247   : > { %897 = vmatprep.subr.mxu1 %v1157_v1 }
 0x248   : > { %931 = vmatpush3.xpose.msra.mxu0 %v549_v20 }
 0x249   : > { %932 = vmatprep.subr.mxu0 %v1157_v1 }
 0x24a   : > { %898 = vmatpush3.xpose.msra.mxu1 %v1026_v19 }
 0x24c   : > { %933 = vmatpush3.xpose.msra.mxu0 %v548_v18 }
 0x24d   : > { %900 = vmatmul.mubr.f32.vlgmr.msra.gmra.mxu1 %v1159_v37 }
 0x24f   : > { %935 = vmatmul.mubr.f32.vlgmr.msra.gmra.mxu0 %v1159_v37 }
 0x30d   : > { %v544_v38 = vpop.f32.mrf.mxu1 }
 0x30e   : > { %1027 = vrcp.f32 %v544_v38 }
 0x30f   : > { %v901_v17 = vpop.f32.mrf.mxu1  ;;  %v630_v39 = vpop.f32.mrf.mxu0 }
 0x311   : > { %v936_v40 = vpop.f32.mrf.mxu0 }
 0x31b   : > { %v1028_v41 = vpop.eup %1027 }
 0x31c   : > { %v635_v42 = vmul.f32 %v1028_v41, %v630_v39 }
 0x31e   : > { %636 = vst [vmem:[%s208_s19] sm:$0x1] %v635_v42 }
 0x31f   : > { %1094 = shalt.err (!%p1091_p9)
}
 0x320   : > { %s1095_s27 = scalar_lea.hbm %s648_s9, 16  ;;  %s1099_s5 = scalar_lea.hbm %s1504_s3, 48 }
 0x321   : > { %p1096_p10 = scmp.ne.s32.totalorder %s648_s9, %s1095_s27  ;;  %p1100_p12 = scmp.lt.s32.totalorder %s648_s9, %s1504_s3 }
 0x322   : > { %p1101_p2 = scmp.lt.s32.totalorder %s1099_s5, %s1095_s27 }
 0x323   : > { %p1097_p6 = pnand %p1096_p10, %p1513_p13 }
 0x324   : > { %p1102_p1 = por %p1101_p2, %p1100_p12 }
 0x325   : > { %p1098_p11 = pneg %p1097_p6 }
 0x327   : > { %p1103_p4 = pnand %p1102_p1, %p1098_p11 }
 0x329   : > { %1106 = shalt.err (!%p1103_p4)
}
 0x32a   : > { %942 = dma.vmem_to_hbm [thread:$0]  (%p1513_p13), %s651_s29, 16, %s648_s9, %s638_s10  }
 0x32b PF: > { %p954_p5 = scmp.ge.s32.totalorder %s1149_s15, 2  ;;  %s662_s23 = sand.u32 1, %s1137_s12  }
 0x32c   : > { %p1514_p0 = scmp.ne.s32.totalorder %s1510_s25, 0  ;;  %s663_s26 = scalar_lea.sflag [#allocation4], %s662_s23 }
 0x32e   : > { %p949_p7 = pnand %p954_p5, %p1514_p0 }
 0x330   : > { %p950_p3 = pneg %p949_p7 }
 0x332   : > { %1132 = dma.done.wait (%p950_p3), %s663_s26, 16  }
 0x333   : > { %1134 = vsyncadd (%p950_p3), %s663_s26, 4294967280  ;;  %p17_p8 = scmp.ge.s32.totalorder %s1206_s18, 5   ;;  %s1515_s12 = smov %s1141_s13 }
 0x334   : > { %s1516_s13 = smov %s1145_s14  ;;  %s1517_s14 = smov %s1218_s21 }
 0x335   : > { %s1518_s15 = smov %s1206_s18  ;;  %19 = sbr.rel (!%p17_p8) target bundleno = 6 (0x6), region = 81 }
 0x33a   :  { %667 = vsyncpa [#allocation3], 1 }
 0x33b   :  { %669 = vsyncpa [#allocation3 + $0x1], 1 }
 0x33c   :  { %670 = vsyncpa [#allocation6], 1 }
 0x33d   :  { %671 = vsyncpa [#allocation4], 1 }
 0x33e   :  { %673 = vsyncpa [#allocation4 + $0x1], 1 }

</bundles_post_ra>
